<compile_context>
chip_gen: v7x
topology: tpu7x:2x2x1
jax: 0.10.0
libtpu: 0.0.40
codegen_flags: <defaults>
</compile_context>

<pallas_src>
import functools

import jax
import jax.numpy as jnp
from jax import lax
from jax.experimental import pallas as pl
from jax.experimental.pallas import tpu as pltpu


def _lnn_kernel(xub_ref, w_ref, wout_ref, bout_ref, out_ref, w_final_ref=None,
                *, T, decay, w_decay, hebb, dt, train, unroll_all,
                readout_vpu, mxu_dtype):
    f32 = jnp.float32
    xUb = xub_ref[...]                              # (B, H)
    B, H = xUb.shape

    def dg(a, b, dims):
        # MXU contraction; operands optionally cast (bf16 on v6e/v7x for large
        # H), accumulation always f32. With mxu_dtype == f32 the casts vanish.
        return lax.dot_general(a.astype(mxu_dtype), b.astype(mxu_dtype), dims,
                               preferred_element_type=f32)

    def mm(a, b):                                   # plain (M,K)@(K,N)
        return dg(a, b, (((1,), (0,)), ((), ())))

    hidden = jnp.zeros((B, H), f32)
    hW = jnp.zeros((B, H), f32)                     # hidden @ W (current step)

    if train:
        if unroll_all:
            # W carried in vregs; written to the aliased output once at the end.
            W = w_ref[...]
            for t in range(T):
                # hidden_{t+1} = decay*h + dt*tanh(h @ W_t + xUb)
                hidden = decay * hidden + dt * jnp.tanh(hW + xUb)
                # Transpose-free h^T @ h (contract axis 0 of both).
                hh = dg(hidden, hidden, (((0,), (0,)), ((), ())))
                if t + 1 < T:
                    # h_{t+1} @ W_{t+1} without waiting on the H^2 W update:
                    #   = w_decay*(h @ W_t) + hebb*((h h^T) h)
                    hhT = dg(hidden, hidden, (((1,), (1,)), ((), ())))
                    hW = w_decay * mm(hidden, W) + hebb * mm(hhT, hidden)
                # H^2 accumulation runs off the hidden-recurrence chain.
                W = w_decay * W + hebb * hh
            w_final_ref[...] = W
        else:
            # Large T / large H: keep W in the aliased output ref, small unroll.
            w_final_ref[...] = w_ref[...]

            def body(t, carry):
                hidden, hW = carry
                hidden = decay * hidden + dt * jnp.tanh(hW + xUb)
                W = w_final_ref[...]
                hhT = dg(hidden, hidden, (((1,), (1,)), ((), ())))
                hW = w_decay * mm(hidden, W) + hebb * mm(hhT, hidden)
                hh = dg(hidden, hidden, (((0,), (0,)), ((), ())))
                w_final_ref[...] = w_decay * W + hebb * hh
                return hidden, hW

            hidden, _ = lax.fori_loop(0, T, body, (hidden, hW), unroll=2)
    else:
        # Inference: W is constant, no Hebbian update, no (H,H) output.
        if unroll_all:
            W = w_ref[...]
            for t in range(T):
                hidden = decay * hidden + dt * jnp.tanh(hW + xUb)
                if t + 1 < T:
                    hW = mm(hidden, W)
        else:
            def body(t, carry):
                hidden, hW = carry
                hidden = decay * hidden + dt * jnp.tanh(hW + xUb)
                hW = mm(hidden, w_ref[...])
                return hidden, hW

            hidden, _ = lax.fori_loop(0, T, body, (hidden, hW), unroll=2)

    wout = wout_ref[...]
    if readout_vpu:
        # O == 1: VPU broadcast-multiply + lane reduce (wout is (1, H)).
        out = jnp.sum(hidden * wout, axis=-1, keepdims=True)
    else:
        # O > 1: wout is (H, O) -> plain MXU dot, no in-kernel transpose.
        out = mm(hidden, wout)
    out_ref[...] = (out + bout_ref[...]).astype(out_ref.dtype)


def lnn_forward(x, U, W, b, W_out, b_out, *, T, alpha, beta, eta,
                deltatime=0.01, train=True, mxu_dtype=None):
    """Returns (output, W_new). In train mode W_new mirrors torch's in-place
    self.W update (and aliases the W input buffer); in eval mode W_new is W."""
    B = x.shape[0]
    H = W.shape[0]
    O = W_out.shape[1]

    x = x.astype(jnp.float32)
    U = U.astype(jnp.float32)
    W = W.astype(jnp.float32)
    b = b.astype(jnp.float32).reshape(1, H)
    W_out = W_out.astype(jnp.float32)
    b_out = b_out.astype(jnp.float32).reshape(1, O)

    # Loop-invariant input drive; keep the K=2 matmul out of the kernel.
    xUb = x @ U + b

    # Fold scalar constants out of the serial recurrence.
    decay = float(1.0 - deltatime * alpha)
    w_decay = float(1.0 - deltatime * beta)
    hebb = float(deltatime * eta / B)

    readout_vpu = (O == 1)
    wout = W_out.T if readout_vpu else W_out          # (1,H) or (H,O)

    # Fully unroll small recurrences (W lives in vregs); fori_loop otherwise.
    unroll_all = (T <= 32) and (H <= 128)

    kernel = functools.partial(
        _lnn_kernel, T=int(T), decay=decay, w_decay=w_decay, hebb=hebb,
        dt=float(deltatime), train=bool(train), unroll_all=unroll_all,
        readout_vpu=readout_vpu,
        mxu_dtype=(jnp.float32 if mxu_dtype is None else mxu_dtype))

    vmem = pl.BlockSpec(memory_space=pltpu.MemorySpace.VMEM)

    # Raise the scoped VMEM limit only when the resident footprint needs it
    # (generation-aware cap; irrelevant at small H).
    est_bytes = 4 * (3 * B * H + 2 * H * H + int(wout.size) + O + B * O)
    compiler_params = None
    if est_bytes > (24 << 20):
        try:
            cap = int(0.9 * pltpu.get_tpu_info().vmem_capacity_bytes)
        except Exception:
            cap = 56 << 20
        compiler_params = pltpu.CompilerParams(
            vmem_limit_bytes=int(min(cap, 2 * est_bytes + (8 << 20))))

    if train:
        out, w_final = pl.pallas_call(
            kernel,
            out_shape=(jax.ShapeDtypeStruct((B, O), jnp.float32),
                       jax.ShapeDtypeStruct((H, H), jnp.float32)),
            in_specs=[vmem, vmem, vmem, vmem],
            out_specs=(vmem, vmem),
            input_output_aliases={1: 1},          # W input -> W_final output
            compiler_params=compiler_params,
        )(xUb, W, wout, b_out)
        return out, w_final
    else:
        out = pl.pallas_call(
            kernel,
            out_shape=jax.ShapeDtypeStruct((B, O), jnp.float32),
            in_specs=[vmem, vmem, vmem, vmem],
            out_specs=vmem,
            compiler_params=compiler_params,
        )(xUb, W, wout, b_out)
        return out, W


def lnn_reference(x, U, W, b, W_out, b_out, *, T, alpha, beta, eta,
                  deltatime=0.01, train=True):
    """Pure-JAX reference mirroring the PyTorch forward (unfused form)."""
    B = x.shape[0]
    H = W.shape[0]
    hidden = jnp.zeros((B, H), jnp.float32)
    Wc = W
    for _ in range(T):
        hidden = hidden + deltatime * (
            -alpha * hidden + jnp.tanh(hidden @ Wc + x @ U + b.reshape(1, -1)))
        if train:
            delta_W = eta * (hidden.T @ hidden) / B - beta * Wc
            Wc = Wc + deltatime * delta_W
    return hidden @ W_out + b_out.reshape(1, -1), Wc


if __name__ == "__main__":
    # Small shapes consistent with the module definition.
    batch_size = 32
    input_size = 2
    hidden_size = 16
    output_size = 1
    T = 10
    alpha = 0.5
    beta = 0.01
    eta = 0.1
    deltatime = 0.01

    key = jax.random.PRNGKey(0)
    k_x, k_W, k_U, k_b, k_wo, k_bo = jax.random.split(key, 6)

    x = jax.random.normal(k_x, (batch_size, input_size), jnp.float32)

    # Parameters (deterministic synthetic init, matching module shapes).
    W = 0.1 * jax.random.normal(k_W, (hidden_size, hidden_size), jnp.float32)
    U = 0.1 * jax.random.normal(k_U, (input_size, hidden_size), jnp.float32)
    b = 0.1 * jax.random.normal(k_b, (1, hidden_size), jnp.float32)
    bound = 1.0 / (hidden_size ** 0.5)
    W_out = jax.random.uniform(k_wo, (hidden_size, output_size), jnp.float32,
                               minval=-bound, maxval=bound)
    b_out = jax.random.uniform(k_bo, (1, output_size), jnp.float32,
                               minval=-bound, maxval=bound)

    cfg = dict(alpha=alpha, beta=beta, eta=eta, deltatime=deltatime)

    # Exercise all code paths: unrolled/fori x train/eval.
    for train, T_ in [(True, T), (False, T), (True, 40), (False, 40)]:
        out, w_new = lnn_forward(x, U, W, b, W_out, b_out, T=T_, train=train,
                                 **cfg)
        out = jax.block_until_ready(out)
        w_new = jax.block_until_ready(w_new)

        ref_out, ref_w = lnn_reference(x, U, W, b, W_out, b_out, T=T_,
                                       train=train, **cfg)

        assert out.shape == (batch_size, output_size)
        assert jnp.allclose(out, ref_out, atol=1e-5, rtol=1e-5), \
            (train, T_, out, ref_out)
        assert jnp.allclose(w_new, ref_w, atol=1e-5, rtol=1e-5), (train, T_)

    print("KERNEL_OK")
</pallas_src>

<mosaic_0001>
module attributes {stable_mosaic.version = 11 : i64} {
  func.func @_lnn_kernel(%arg0: memref<32x16xf32, #tpu.memory_space<vmem>>, %arg1: memref<16x16xf32, #tpu.memory_space<vmem>>, %arg2: memref<1x16xf32, #tpu.memory_space<vmem>>, %arg3: memref<1x1xf32, #tpu.memory_space<vmem>>, %arg4: memref<32x1xf32, #tpu.memory_space<vmem>>, %arg5: memref<16x16xf32, #tpu.memory_space<vmem>>) attributes {dimension_semantics = [], scalar_prefetch = 0 : i64, scratch_operands = 0 : i64, tpu.core_type = #tpu.core_type<tc>} {
    %c0 = arith.constant 0 : index
    %c0_0 = arith.constant 0 : index
    %0 = vector.load %arg0[%c0, %c0_0] : memref<32x16xf32, #tpu.memory_space<vmem>>, vector<32x16xf32>
    %cst = arith.constant 0.000000e+00 : f32
    %1 = vector.broadcast %cst : f32 to vector<32x16xf32>
    %cst_1 = arith.constant 0.000000e+00 : f32
    %2 = vector.broadcast %cst_1 : f32 to vector<32x16xf32>
    %c0_2 = arith.constant 0 : index
    %c0_3 = arith.constant 0 : index
    %3 = vector.load %arg1[%c0_2, %c0_3] : memref<16x16xf32, #tpu.memory_space<vmem>>, vector<16x16xf32>
    %cst_4 = arith.constant 9.950000e-01 : f32
    %4 = vector.broadcast %cst_4 : f32 to vector<32x16xf32>
    %5 = arith.mulf %4, %1 : vector<32x16xf32>
    %6 = arith.addf %2, %0 : vector<32x16xf32>
    %7 = math.tanh %6 : vector<32x16xf32>
    %cst_5 = arith.constant 0.00999999977 : f32
    %8 = vector.broadcast %cst_5 : f32 to vector<32x16xf32>
    %9 = arith.mulf %8, %7 : vector<32x16xf32>
    %10 = arith.addf %5, %9 : vector<32x16xf32>
    %cst_6 = arith.constant dense<0.000000e+00> : vector<16x16xf32>
    %11 = tpu.matmul %10, %10, %cst_6 {dimension_numbers = #tpu.dot_dimension_numbers<[0], [0], [1], [1], [0, 1, 1, 1], [], []>} : vector<32x16xf32>, vector<32x16xf32>, vector<16x16xf32> -> vector<16x16xf32>
    %cst_7 = arith.constant dense<0.000000e+00> : vector<32x32xf32>
    %12 = tpu.matmul %10, %10, %cst_7 {dimension_numbers = #tpu.dot_dimension_numbers<[1], [1], [0], [0], [0, 0, 1, 0], [], []>} : vector<32x16xf32>, vector<32x16xf32>, vector<32x32xf32> -> vector<32x32xf32>
    %cst_8 = arith.constant dense<0.000000e+00> : vector<32x16xf32>
    %13 = tpu.matmul %10, %3, %cst_8 {dimension_numbers = #tpu.dot_dimension_numbers<[1], [0], [0], [1], [0, 0, 1, 1], [], []>} : vector<32x16xf32>, vector<16x16xf32>, vector<32x16xf32> -> vector<32x16xf32>
    %cst_9 = arith.constant 0.999899983 : f32
    %14 = vector.broadcast %cst_9 : f32 to vector<32x16xf32>
    %15 = arith.mulf %14, %13 : vector<32x16xf32>
    %cst_10 = arith.constant dense<0.000000e+00> : vector<32x16xf32>
    %16 = tpu.matmul %12, %10, %cst_10 {dimension_numbers = #tpu.dot_dimension_numbers<[1], [0], [0], [1], [0, 0, 1, 1], [], []>} : vector<32x32xf32>, vector<32x16xf32>, vector<32x16xf32> -> vector<32x16xf32>
    %cst_11 = arith.constant 3.125000e-05 : f32
    %17 = vector.broadcast %cst_11 : f32 to vector<32x16xf32>
    %18 = arith.mulf %17, %16 : vector<32x16xf32>
    %19 = arith.addf %15, %18 : vector<32x16xf32>
    %cst_12 = arith.constant 0.999899983 : f32
    %20 = vector.broadcast %cst_12 : f32 to vector<16x16xf32>
    %21 = arith.mulf %20, %3 : vector<16x16xf32>
    %cst_13 = arith.constant 3.125000e-05 : f32
    %22 = vector.broadcast %cst_13 : f32 to vector<16x16xf32>
    %23 = arith.mulf %22, %11 : vector<16x16xf32>
    %24 = arith.addf %21, %23 : vector<16x16xf32>
    %cst_14 = arith.constant 9.950000e-01 : f32
    %25 = vector.broadcast %cst_14 : f32 to vector<32x16xf32>
    %26 = arith.mulf %25, %10 : vector<32x16xf32>
    %27 = arith.addf %19, %0 : vector<32x16xf32>
    %28 = math.tanh %27 : vector<32x16xf32>
    %cst_15 = arith.constant 0.00999999977 : f32
    %29 = vector.broadcast %cst_15 : f32 to vector<32x16xf32>
    %30 = arith.mulf %29, %28 : vector<32x16xf32>
    %31 = arith.addf %26, %30 : vector<32x16xf32>
    %cst_16 = arith.constant dense<0.000000e+00> : vector<16x16xf32>
    %32 = tpu.matmul %31, %31, %cst_16 {dimension_numbers = #tpu.dot_dimension_numbers<[0], [0], [1], [1], [0, 1, 1, 1], [], []>} : vector<32x16xf32>, vector<32x16xf32>, vector<16x16xf32> -> vector<16x16xf32>
    %cst_17 = arith.constant dense<0.000000e+00> : vector<32x32xf32>
    %33 = tpu.matmul %31, %31, %cst_17 {dimension_numbers = #tpu.dot_dimension_numbers<[1], [1], [0], [0], [0, 0, 1, 0], [], []>} : vector<32x16xf32>, vector<32x16xf32>, vector<32x32xf32> -> vector<32x32xf32>
    %cst_18 = arith.constant dense<0.000000e+00> : vector<32x16xf32>
    %34 = tpu.matmul %31, %24, %cst_18 {dimension_numbers = #tpu.dot_dimension_numbers<[1], [0], [0], [1], [0, 0, 1, 1], [], []>} : vector<32x16xf32>, vector<16x16xf32>, vector<32x16xf32> -> vector<32x16xf32>
    %cst_19 = arith.constant 0.999899983 : f32
    %35 = vector.broadcast %cst_19 : f32 to vector<32x16xf32>
    %36 = arith.mulf %35, %34 : vector<32x16xf32>
    %cst_20 = arith.constant dense<0.000000e+00> : vector<32x16xf32>
    %37 = tpu.matmul %33, %31, %cst_20 {dimension_numbers = #tpu.dot_dimension_numbers<[1], [0], [0], [1], [0, 0, 1, 1], [], []>} : vector<32x32xf32>, vector<32x16xf32>, vector<32x16xf32> -> vector<32x16xf32>
    %cst_21 = arith.constant 3.125000e-05 : f32
    %38 = vector.broadcast %cst_21 : f32 to vector<32x16xf32>
    %39 = arith.mulf %38, %37 : vector<32x16xf32>
    %40 = arith.addf %36, %39 : vector<32x16xf32>
    %cst_22 = arith.constant 0.999899983 : f32
    %41 = vector.broadcast %cst_22 : f32 to vector<16x16xf32>
    %42 = arith.mulf %41, %24 : vector<16x16xf32>
    %cst_23 = arith.constant 3.125000e-05 : f32
    %43 = vector.broadcast %cst_23 : f32 to vector<16x16xf32>
    %44 = arith.mulf %43, %32 : vector<16x16xf32>
    %45 = arith.addf %42, %44 : vector<16x16xf32>
    %cst_24 = arith.constant 9.950000e-01 : f32
    %46 = vector.broadcast %cst_24 : f32 to vector<32x16xf32>
    %47 = arith.mulf %46, %31 : vector<32x16xf32>
    %48 = arith.addf %40, %0 : vector<32x16xf32>
    %49 = math.tanh %48 : vector<32x16xf32>
    %cst_25 = arith.constant 0.00999999977 : f32
    %50 = vector.broadcast %cst_25 : f32 to vector<32x16xf32>
    %51 = arith.mulf %50, %49 : vector<32x16xf32>
    %52 = arith.addf %47, %51 : vector<32x16xf32>
    %cst_26 = arith.constant dense<0.000000e+00> : vector<16x16xf32>
    %53 = tpu.matmul %52, %52, %cst_26 {dimension_numbers = #tpu.dot_dimension_numbers<[0], [0], [1], [1], [0, 1, 1, 1], [], []>} : vector<32x16xf32>, vector<32x16xf32>, vector<16x16xf32> -> vector<16x16xf32>
    %cst_27 = arith.constant dense<0.000000e+00> : vector<32x32xf32>
    %54 = tpu.matmul %52, %52, %cst_27 {dimension_numbers = #tpu.dot_dimension_numbers<[1], [1], [0], [0], [0, 0, 1, 0], [], []>} : vector<32x16xf32>, vector<32x16xf32>, vector<32x32xf32> -> vector<32x32xf32>
    %cst_28 = arith.constant dense<0.000000e+00> : vector<32x16xf32>
    %55 = tpu.matmul %52, %45, %cst_28 {dimension_numbers = #tpu.dot_dimension_numbers<[1], [0], [0], [1], [0, 0, 1, 1], [], []>} : vector<32x16xf32>, vector<16x16xf32>, vector<32x16xf32> -> vector<32x16xf32>
    %cst_29 = arith.constant 0.999899983 : f32
    %56 = vector.broadcast %cst_29 : f32 to vector<32x16xf32>
    %57 = arith.mulf %56, %55 : vector<32x16xf32>
    %cst_30 = arith.constant dense<0.000000e+00> : vector<32x16xf32>
    %58 = tpu.matmul %54, %52, %cst_30 {dimension_numbers = #tpu.dot_dimension_numbers<[1], [0], [0], [1], [0, 0, 1, 1], [], []>} : vector<32x32xf32>, vector<32x16xf32>, vector<32x16xf32> -> vector<32x16xf32>
    %cst_31 = arith.constant 3.125000e-05 : f32
    %59 = vector.broadcast %cst_31 : f32 to vector<32x16xf32>
    %60 = arith.mulf %59, %58 : vector<32x16xf32>
    %61 = arith.addf %57, %60 : vector<32x16xf32>
    %cst_32 = arith.constant 0.999899983 : f32
    %62 = vector.broadcast %cst_32 : f32 to vector<16x16xf32>
    %63 = arith.mulf %62, %45 : vector<16x16xf32>
    %cst_33 = arith.constant 3.125000e-05 : f32
    %64 = vector.broadcast %cst_33 : f32 to vector<16x16xf32>
    %65 = arith.mulf %64, %53 : vector<16x16xf32>
    %66 = arith.addf %63, %65 : vector<16x16xf32>
    %cst_34 = arith.constant 9.950000e-01 : f32
    %67 = vector.broadcast %cst_34 : f32 to vector<32x16xf32>
    %68 = arith.mulf %67, %52 : vector<32x16xf32>
    %69 = arith.addf %61, %0 : vector<32x16xf32>
    %70 = math.tanh %69 : vector<32x16xf32>
    %cst_35 = arith.constant 0.00999999977 : f32
    %71 = vector.broadcast %cst_35 : f32 to vector<32x16xf32>
    %72 = arith.mulf %71, %70 : vector<32x16xf32>
    %73 = arith.addf %68, %72 : vector<32x16xf32>
    %cst_36 = arith.constant dense<0.000000e+00> : vector<16x16xf32>
    %74 = tpu.matmul %73, %73, %cst_36 {dimension_numbers = #tpu.dot_dimension_numbers<[0], [0], [1], [1], [0, 1, 1, 1], [], []>} : vector<32x16xf32>, vector<32x16xf32>, vector<16x16xf32> -> vector<16x16xf32>
    %cst_37 = arith.constant dense<0.000000e+00> : vector<32x32xf32>
    %75 = tpu.matmul %73, %73, %cst_37 {dimension_numbers = #tpu.dot_dimension_numbers<[1], [1], [0], [0], [0, 0, 1, 0], [], []>} : vector<32x16xf32>, vector<32x16xf32>, vector<32x32xf32> -> vector<32x32xf32>
    %cst_38 = arith.constant dense<0.000000e+00> : vector<32x16xf32>
    %76 = tpu.matmul %73, %66, %cst_38 {dimension_numbers = #tpu.dot_dimension_numbers<[1], [0], [0], [1], [0, 0, 1, 1], [], []>} : vector<32x16xf32>, vector<16x16xf32>, vector<32x16xf32> -> vector<32x16xf32>
    %cst_39 = arith.constant 0.999899983 : f32
    %77 = vector.broadcast %cst_39 : f32 to vector<32x16xf32>
    %78 = arith.mulf %77, %76 : vector<32x16xf32>
    %cst_40 = arith.constant dense<0.000000e+00> : vector<32x16xf32>
    %79 = tpu.matmul %75, %73, %cst_40 {dimension_numbers = #tpu.dot_dimension_numbers<[1], [0], [0], [1], [0, 0, 1, 1], [], []>} : vector<32x32xf32>, vector<32x16xf32>, vector<32x16xf32> -> vector<32x16xf32>
    %cst_41 = arith.constant 3.125000e-05 : f32
    %80 = vector.broadcast %cst_41 : f32 to vector<32x16xf32>
    %81 = arith.mulf %80, %79 : vector<32x16xf32>
    %82 = arith.addf %78, %81 : vector<32x16xf32>
    %cst_42 = arith.constant 0.999899983 : f32
    %83 = vector.broadcast %cst_42 : f32 to vector<16x16xf32>
    %84 = arith.mulf %83, %66 : vector<16x16xf32>
    %cst_43 = arith.constant 3.125000e-05 : f32
    %85 = vector.broadcast %cst_43 : f32 to vector<16x16xf32>
    %86 = arith.mulf %85, %74 : vector<16x16xf32>
    %87 = arith.addf %84, %86 : vector<16x16xf32>
    %cst_44 = arith.constant 9.950000e-01 : f32
    %88 = vector.broadcast %cst_44 : f32 to vector<32x16xf32>
    %89 = arith.mulf %88, %73 : vector<32x16xf32>
    %90 = arith.addf %82, %0 : vector<32x16xf32>
    %91 = math.tanh %90 : vector<32x16xf32>
    %cst_45 = arith.constant 0.00999999977 : f32
    %92 = vector.broadcast %cst_45 : f32 to vector<32x16xf32>
    %93 = arith.mulf %92, %91 : vector<32x16xf32>
    %94 = arith.addf %89, %93 : vector<32x16xf32>
    %cst_46 = arith.constant dense<0.000000e+00> : vector<16x16xf32>
    %95 = tpu.matmul %94, %94, %cst_46 {dimension_numbers = #tpu.dot_dimension_numbers<[0], [0], [1], [1], [0, 1, 1, 1], [], []>} : vector<32x16xf32>, vector<32x16xf32>, vector<16x16xf32> -> vector<16x16xf32>
    %cst_47 = arith.constant dense<0.000000e+00> : vector<32x32xf32>
    %96 = tpu.matmul %94, %94, %cst_47 {dimension_numbers = #tpu.dot_dimension_numbers<[1], [1], [0], [0], [0, 0, 1, 0], [], []>} : vector<32x16xf32>, vector<32x16xf32>, vector<32x32xf32> -> vector<32x32xf32>
    %cst_48 = arith.constant dense<0.000000e+00> : vector<32x16xf32>
    %97 = tpu.matmul %94, %87, %cst_48 {dimension_numbers = #tpu.dot_dimension_numbers<[1], [0], [0], [1], [0, 0, 1, 1], [], []>} : vector<32x16xf32>, vector<16x16xf32>, vector<32x16xf32> -> vector<32x16xf32>
    %cst_49 = arith.constant 0.999899983 : f32
    %98 = vector.broadcast %cst_49 : f32 to vector<32x16xf32>
    %99 = arith.mulf %98, %97 : vector<32x16xf32>
    %cst_50 = arith.constant dense<0.000000e+00> : vector<32x16xf32>
    %100 = tpu.matmul %96, %94, %cst_50 {dimension_numbers = #tpu.dot_dimension_numbers<[1], [0], [0], [1], [0, 0, 1, 1], [], []>} : vector<32x32xf32>, vector<32x16xf32>, vector<32x16xf32> -> vector<32x16xf32>
    %cst_51 = arith.constant 3.125000e-05 : f32
    %101 = vector.broadcast %cst_51 : f32 to vector<32x16xf32>
    %102 = arith.mulf %101, %100 : vector<32x16xf32>
    %103 = arith.addf %99, %102 : vector<32x16xf32>
    %cst_52 = arith.constant 0.999899983 : f32
    %104 = vector.broadcast %cst_52 : f32 to vector<16x16xf32>
    %105 = arith.mulf %104, %87 : vector<16x16xf32>
    %cst_53 = arith.constant 3.125000e-05 : f32
    %106 = vector.broadcast %cst_53 : f32 to vector<16x16xf32>
    %107 = arith.mulf %106, %95 : vector<16x16xf32>
    %108 = arith.addf %105, %107 : vector<16x16xf32>
    %cst_54 = arith.constant 9.950000e-01 : f32
    %109 = vector.broadcast %cst_54 : f32 to vector<32x16xf32>
    %110 = arith.mulf %109, %94 : vector<32x16xf32>
    %111 = arith.addf %103, %0 : vector<32x16xf32>
    %112 = math.tanh %111 : vector<32x16xf32>
    %cst_55 = arith.constant 0.00999999977 : f32
    %113 = vector.broadcast %cst_55 : f32 to vector<32x16xf32>
    %114 = arith.mulf %113, %112 : vector<32x16xf32>
    %115 = arith.addf %110, %114 : vector<32x16xf32>
    %cst_56 = arith.constant dense<0.000000e+00> : vector<16x16xf32>
    %116 = tpu.matmul %115, %115, %cst_56 {dimension_numbers = #tpu.dot_dimension_numbers<[0], [0], [1], [1], [0, 1, 1, 1], [], []>} : vector<32x16xf32>, vector<32x16xf32>, vector<16x16xf32> -> vector<16x16xf32>
    %cst_57 = arith.constant dense<0.000000e+00> : vector<32x32xf32>
    %117 = tpu.matmul %115, %115, %cst_57 {dimension_numbers = #tpu.dot_dimension_numbers<[1], [1], [0], [0], [0, 0, 1, 0], [], []>} : vector<32x16xf32>, vector<32x16xf32>, vector<32x32xf32> -> vector<32x32xf32>
    %cst_58 = arith.constant dense<0.000000e+00> : vector<32x16xf32>
    %118 = tpu.matmul %115, %108, %cst_58 {dimension_numbers = #tpu.dot_dimension_numbers<[1], [0], [0], [1], [0, 0, 1, 1], [], []>} : vector<32x16xf32>, vector<16x16xf32>, vector<32x16xf32> -> vector<32x16xf32>
    %cst_59 = arith.constant 0.999899983 : f32
    %119 = vector.broadcast %cst_59 : f32 to vector<32x16xf32>
    %120 = arith.mulf %119, %118 : vector<32x16xf32>
    %cst_60 = arith.constant dense<0.000000e+00> : vector<32x16xf32>
    %121 = tpu.matmul %117, %115, %cst_60 {dimension_numbers = #tpu.dot_dimension_numbers<[1], [0], [0], [1], [0, 0, 1, 1], [], []>} : vector<32x32xf32>, vector<32x16xf32>, vector<32x16xf32> -> vector<32x16xf32>
    %cst_61 = arith.constant 3.125000e-05 : f32
    %122 = vector.broadcast %cst_61 : f32 to vector<32x16xf32>
    %123 = arith.mulf %122, %121 : vector<32x16xf32>
    %124 = arith.addf %120, %123 : vector<32x16xf32>
    %cst_62 = arith.constant 0.999899983 : f32
    %125 = vector.broadcast %cst_62 : f32 to vector<16x16xf32>
    %126 = arith.mulf %125, %108 : vector<16x16xf32>
    %cst_63 = arith.constant 3.125000e-05 : f32
    %127 = vector.broadcast %cst_63 : f32 to vector<16x16xf32>
    %128 = arith.mulf %127, %116 : vector<16x16xf32>
    %129 = arith.addf %126, %128 : vector<16x16xf32>
    %cst_64 = arith.constant 9.950000e-01 : f32
    %130 = vector.broadcast %cst_64 : f32 to vector<32x16xf32>
    %131 = arith.mulf %130, %115 : vector<32x16xf32>
    %132 = arith.addf %124, %0 : vector<32x16xf32>
    %133 = math.tanh %132 : vector<32x16xf32>
    %cst_65 = arith.constant 0.00999999977 : f32
    %134 = vector.broadcast %cst_65 : f32 to vector<32x16xf32>
    %135 = arith.mulf %134, %133 : vector<32x16xf32>
    %136 = arith.addf %131, %135 : vector<32x16xf32>
    %cst_66 = arith.constant dense<0.000000e+00> : vector<16x16xf32>
    %137 = tpu.matmul %136, %136, %cst_66 {dimension_numbers = #tpu.dot_dimension_numbers<[0], [0], [1], [1], [0, 1, 1, 1], [], []>} : vector<32x16xf32>, vector<32x16xf32>, vector<16x16xf32> -> vector<16x16xf32>
    %cst_67 = arith.constant dense<0.000000e+00> : vector<32x32xf32>
    %138 = tpu.matmul %136, %136, %cst_67 {dimension_numbers = #tpu.dot_dimension_numbers<[1], [1], [0], [0], [0, 0, 1, 0], [], []>} : vector<32x16xf32>, vector<32x16xf32>, vector<32x32xf32> -> vector<32x32xf32>
    %cst_68 = arith.constant dense<0.000000e+00> : vector<32x16xf32>
    %139 = tpu.matmul %136, %129, %cst_68 {dimension_numbers = #tpu.dot_dimension_numbers<[1], [0], [0], [1], [0, 0, 1, 1], [], []>} : vector<32x16xf32>, vector<16x16xf32>, vector<32x16xf32> -> vector<32x16xf32>
    %cst_69 = arith.constant 0.999899983 : f32
    %140 = vector.broadcast %cst_69 : f32 to vector<32x16xf32>
    %141 = arith.mulf %140, %139 : vector<32x16xf32>
    %cst_70 = arith.constant dense<0.000000e+00> : vector<32x16xf32>
    %142 = tpu.matmul %138, %136, %cst_70 {dimension_numbers = #tpu.dot_dimension_numbers<[1], [0], [0], [1], [0, 0, 1, 1], [], []>} : vector<32x32xf32>, vector<32x16xf32>, vector<32x16xf32> -> vector<32x16xf32>
    %cst_71 = arith.constant 3.125000e-05 : f32
    %143 = vector.broadcast %cst_71 : f32 to vector<32x16xf32>
    %144 = arith.mulf %143, %142 : vector<32x16xf32>
    %145 = arith.addf %141, %144 : vector<32x16xf32>
    %cst_72 = arith.constant 0.999899983 : f32
    %146 = vector.broadcast %cst_72 : f32 to vector<16x16xf32>
    %147 = arith.mulf %146, %129 : vector<16x16xf32>
    %cst_73 = arith.constant 3.125000e-05 : f32
    %148 = vector.broadcast %cst_73 : f32 to vector<16x16xf32>
    %149 = arith.mulf %148, %137 : vector<16x16xf32>
    %150 = arith.addf %147, %149 : vector<16x16xf32>
    %cst_74 = arith.constant 9.950000e-01 : f32
    %151 = vector.broadcast %cst_74 : f32 to vector<32x16xf32>
    %152 = arith.mulf %151, %136 : vector<32x16xf32>
    %153 = arith.addf %145, %0 : vector<32x16xf32>
    %154 = math.tanh %153 : vector<32x16xf32>
    %cst_75 = arith.constant 0.00999999977 : f32
    %155 = vector.broadcast %cst_75 : f32 to vector<32x16xf32>
    %156 = arith.mulf %155, %154 : vector<32x16xf32>
    %157 = arith.addf %152, %156 : vector<32x16xf32>
    %cst_76 = arith.constant dense<0.000000e+00> : vector<16x16xf32>
    %158 = tpu.matmul %157, %157, %cst_76 {dimension_numbers = #tpu.dot_dimension_numbers<[0], [0], [1], [1], [0, 1, 1, 1], [], []>} : vector<32x16xf32>, vector<32x16xf32>, vector<16x16xf32> -> vector<16x16xf32>
    %cst_77 = arith.constant dense<0.000000e+00> : vector<32x32xf32>
    %159 = tpu.matmul %157, %157, %cst_77 {dimension_numbers = #tpu.dot_dimension_numbers<[1], [1], [0], [0], [0, 0, 1, 0], [], []>} : vector<32x16xf32>, vector<32x16xf32>, vector<32x32xf32> -> vector<32x32xf32>
    %cst_78 = arith.constant dense<0.000000e+00> : vector<32x16xf32>
    %160 = tpu.matmul %157, %150, %cst_78 {dimension_numbers = #tpu.dot_dimension_numbers<[1], [0], [0], [1], [0, 0, 1, 1], [], []>} : vector<32x16xf32>, vector<16x16xf32>, vector<32x16xf32> -> vector<32x16xf32>
    %cst_79 = arith.constant 0.999899983 : f32
    %161 = vector.broadcast %cst_79 : f32 to vector<32x16xf32>
    %162 = arith.mulf %161, %160 : vector<32x16xf32>
    %cst_80 = arith.constant dense<0.000000e+00> : vector<32x16xf32>
    %163 = tpu.matmul %159, %157, %cst_80 {dimension_numbers = #tpu.dot_dimension_numbers<[1], [0], [0], [1], [0, 0, 1, 1], [], []>} : vector<32x32xf32>, vector<32x16xf32>, vector<32x16xf32> -> vector<32x16xf32>
    %cst_81 = arith.constant 3.125000e-05 : f32
    %164 = vector.broadcast %cst_81 : f32 to vector<32x16xf32>
    %165 = arith.mulf %164, %163 : vector<32x16xf32>
    %166 = arith.addf %162, %165 : vector<32x16xf32>
    %cst_82 = arith.constant 0.999899983 : f32
    %167 = vector.broadcast %cst_82 : f32 to vector<16x16xf32>
    %168 = arith.mulf %167, %150 : vector<16x16xf32>
    %cst_83 = arith.constant 3.125000e-05 : f32
    %169 = vector.broadcast %cst_83 : f32 to vector<16x16xf32>
    %170 = arith.mulf %169, %158 : vector<16x16xf32>
    %171 = arith.addf %168, %170 : vector<16x16xf32>
    %cst_84 = arith.constant 9.950000e-01 : f32
    %172 = vector.broadcast %cst_84 : f32 to vector<32x16xf32>
    %173 = arith.mulf %172, %157 : vector<32x16xf32>
    %174 = arith.addf %166, %0 : vector<32x16xf32>
    %175 = math.tanh %174 : vector<32x16xf32>
    %cst_85 = arith.constant 0.00999999977 : f32
    %176 = vector.broadcast %cst_85 : f32 to vector<32x16xf32>
    %177 = arith.mulf %176, %175 : vector<32x16xf32>
    %178 = arith.addf %173, %177 : vector<32x16xf32>
    %cst_86 = arith.constant dense<0.000000e+00> : vector<16x16xf32>
    %179 = tpu.matmul %178, %178, %cst_86 {dimension_numbers = #tpu.dot_dimension_numbers<[0], [0], [1], [1], [0, 1, 1, 1], [], []>} : vector<32x16xf32>, vector<32x16xf32>, vector<16x16xf32> -> vector<16x16xf32>
    %cst_87 = arith.constant dense<0.000000e+00> : vector<32x32xf32>
    %180 = tpu.matmul %178, %178, %cst_87 {dimension_numbers = #tpu.dot_dimension_numbers<[1], [1], [0], [0], [0, 0, 1, 0], [], []>} : vector<32x16xf32>, vector<32x16xf32>, vector<32x32xf32> -> vector<32x32xf32>
    %cst_88 = arith.constant dense<0.000000e+00> : vector<32x16xf32>
    %181 = tpu.matmul %178, %171, %cst_88 {dimension_numbers = #tpu.dot_dimension_numbers<[1], [0], [0], [1], [0, 0, 1, 1], [], []>} : vector<32x16xf32>, vector<16x16xf32>, vector<32x16xf32> -> vector<32x16xf32>
    %cst_89 = arith.constant 0.999899983 : f32
    %182 = vector.broadcast %cst_89 : f32 to vector<32x16xf32>
    %183 = arith.mulf %182, %181 : vector<32x16xf32>
    %cst_90 = arith.constant dense<0.000000e+00> : vector<32x16xf32>
    %184 = tpu.matmul %180, %178, %cst_90 {dimension_numbers = #tpu.dot_dimension_numbers<[1], [0], [0], [1], [0, 0, 1, 1], [], []>} : vector<32x32xf32>, vector<32x16xf32>, vector<32x16xf32> -> vector<32x16xf32>
    %cst_91 = arith.constant 3.125000e-05 : f32
    %185 = vector.broadcast %cst_91 : f32 to vector<32x16xf32>
    %186 = arith.mulf %185, %184 : vector<32x16xf32>
    %187 = arith.addf %183, %186 : vector<32x16xf32>
    %cst_92 = arith.constant 0.999899983 : f32
    %188 = vector.broadcast %cst_92 : f32 to vector<16x16xf32>
    %189 = arith.mulf %188, %171 : vector<16x16xf32>
    %cst_93 = arith.constant 3.125000e-05 : f32
    %190 = vector.broadcast %cst_93 : f32 to vector<16x16xf32>
    %191 = arith.mulf %190, %179 : vector<16x16xf32>
    %192 = arith.addf %189, %191 : vector<16x16xf32>
    %cst_94 = arith.constant 9.950000e-01 : f32
    %193 = vector.broadcast %cst_94 : f32 to vector<32x16xf32>
    %194 = arith.mulf %193, %178 : vector<32x16xf32>
    %195 = arith.addf %187, %0 : vector<32x16xf32>
    %196 = math.tanh %195 : vector<32x16xf32>
    %cst_95 = arith.constant 0.00999999977 : f32
    %197 = vector.broadcast %cst_95 : f32 to vector<32x16xf32>
    %198 = arith.mulf %197, %196 : vector<32x16xf32>
    %199 = arith.addf %194, %198 : vector<32x16xf32>
    %cst_96 = arith.constant dense<0.000000e+00> : vector<16x16xf32>
    %200 = tpu.matmul %199, %199, %cst_96 {dimension_numbers = #tpu.dot_dimension_numbers<[0], [0], [1], [1], [0, 1, 1, 1], [], []>} : vector<32x16xf32>, vector<32x16xf32>, vector<16x16xf32> -> vector<16x16xf32>
    %cst_97 = arith.constant 0.999899983 : f32
    %201 = vector.broadcast %cst_97 : f32 to vector<16x16xf32>
    %202 = arith.mulf %201, %192 : vector<16x16xf32>
    %cst_98 = arith.constant 3.125000e-05 : f32
    %203 = vector.broadcast %cst_98 : f32 to vector<16x16xf32>
    %204 = arith.mulf %203, %200 : vector<16x16xf32>
    %205 = arith.addf %202, %204 : vector<16x16xf32>
    %c0_99 = arith.constant 0 : index
    %c0_100 = arith.constant 0 : index
    %206 = vector.load %arg5[%c0_99, %c0_100] : memref<16x16xf32, #tpu.memory_space<vmem>>, vector<16x16xf32>
    tpu.vector_store %arg5[%c0_99, %c0_100], %205 {strides = array<i32>} : memref<16x16xf32, #tpu.memory_space<vmem>>, vector<16x16xf32>,
    %c0_101 = arith.constant 0 : index
    %c0_102 = arith.constant 0 : index
    %207 = vector.load %arg2[%c0_101, %c0_102] : memref<1x16xf32, #tpu.memory_space<vmem>>, vector<1x16xf32>
    %208 = vector.broadcast %207 : vector<1x16xf32> to vector<32x16xf32>
    %209 = arith.mulf %199, %208 : vector<32x16xf32>
    %cst_103 = arith.constant dense<0.000000e+00> : vector<32xf32>
    %210 = vector.multi_reduction <add>, %209, %cst_103 [1] : vector<32x16xf32> to vector<32xf32>
    %211 = vector.shape_cast %210 : vector<32xf32> to vector<32x1xf32>
    %c0_104 = arith.constant 0 : index
    %c0_105 = arith.constant 0 : index
    %212 = vector.load %arg3[%c0_104, %c0_105] : memref<1x1xf32, #tpu.memory_space<vmem>>, vector<1x1xf32>
    %213 = vector.broadcast %212 : vector<1x1xf32> to vector<32x1xf32>
    %214 = arith.addf %211, %213 : vector<32x1xf32>
    %c0_106 = arith.constant 0 : index
    %c0_107 = arith.constant 0 : index
    %215 = vector.load %arg4[%c0_106, %c0_107] : memref<32x1xf32, #tpu.memory_space<vmem>>, vector<32x1xf32>
    tpu.vector_store %arg4[%c0_106, %c0_107], %214 {strides = array<i32>} : memref<32x1xf32, #tpu.memory_space<vmem>>, vector<32x1xf32>,
    return
  }
}

</mosaic_0001>

<bundles_post_ra>
// kernel: tpu_custom_call.1
= control target key start
LH: loop header
LB: loop body
LE: loop exit
PB: predicated region body
PF: predicated region fallthrough
CT: control target
= control target key end

     0   :  { %vm157_vm0 = vcmask 130048   ;;  %vm75_vm2 = vcmask 261120   ;;  %vm4070_vm3 = vcmask 7168   ;;  %s6046_s0 = inlined_call_operand.vmem [shape: f32[32,16], index: 0, kind: input, shape index: {}]   ;;  %s6047_s1 = inlined_call_operand.vmem [shape: f32[16,16], index: 1, kind: input, shape index: {}, may-alias: {1,5}]   ;;  %s6048_s2 = inlined_call_operand.vmem [shape: f32[1,16], index: 2, kind: input, shape index: {}]   ;;  %s6049_s3 = inlined_call_operand.<no memory space> [shape: f32[1,1], index: 3, kind: input, shape index: {}]   ;;  %s6050_s4 = inlined_call_operand.vmem [shape: f32[32,1], index: 4, kind: output, shape index: {0}]   ;;  %s6051_s5 = inlined_call_operand.vmem [shape: f32[16,16], index: 5, kind: output, shape index: {1}, may-alias: {1,5}]  }
   0x1   :  { %v5373_v0 = vld [vmem:[%s6046_s0] sm:$0xff]  ;;  %v5378_v1 = vld [vmem:[%s6046_s0 + $0x8] sm:$0xff]  ;;  %v5384_v2 = vld [vmem:[%s6046_s0 + $0x10] sm:$0xff] }
   0x2   :  { %5256 = vtanh.f32 %v5373_v0  ;;  %v5389_v3 = vld [vmem:[%s6046_s0 + $0x18] sm:$0xff]  ;;  %vm5400_vm1 = vmpackc.low %vm157_vm0, %vm157_vm0  ;;  %v25_v15 = vld [vmem:[%s6047_s1] sm:$0xff] }
   0x3   :  { %5258 = vtanh.f32 %v5378_v1  ;;  %v26_v16 = vld [vmem:[%s6047_s1 + $0x8] sm:$0xff]  ;;  %v449_v26 = vmul.f32 0.9999, %v25_v15 }
   0x4   :  { %5260 = vtanh.f32 %v5384_v2  ;;  %v4979_v17 = vpack.c.bf16 %v26_v16, %v25_v15  ;;  %v450_v24 = vmul.f32 0.9999, %v26_v16 }
   0x5   :  { %5262 = vtanh.f32 %v5389_v3 }
   0xc   :  { %v5257_v4 = vpop.eup %5256 }
   0xd   :  { %v5259_v5 = vpop.eup %5258  ;;  %v5394_v6 = vmul.f32 0.01, %v5257_v4 }
   0xe   :  { %v5261_v7 = vpop.eup %5260  ;;  %v5396_v8 = vmul.f32 0.01, %v5259_v5 }
   0xf   :  { %v5263_v9 = vpop.eup %5262  ;;  %v5404_v11 = vmul.f32 0.01, %v5261_v7  ;;  %4526 = vmatprep.mubr.msk.f32.mxu1 %vm157_vm0, %v5394_v6  ;;  %43 = vxpose.xlu0.b32.start [1/4] (short) (narrow) %v5394_v6, 16  ;;  %v455_v59 = vmul.f32 0.995, %v5394_v6 }
  0x10   :  { %v4959_v12 = vpack.c.bf16 %v5396_v8, %v5394_v6  ;;  %v5411_v13 = vmul.f32 0.01, %v5263_v9  ;;  %v456_v57 = vmul.f32 0.995, %v5396_v8 }
  0x11   :  { %v457_v9 = vmul.f32 0.995, %v5404_v11 }
  0x12   :  { %4969 = vmatprep.subr.msk.bf16.mxu1 %vm5400_vm1, %v4959_v12  ;;  %v4963_v14 = vpack.c.bf16 %v5411_v13, %v5404_v11  ;;  %4960 = vmatprep.subr.bf16.mxu0 %v4959_v12  ;;  %v458_v4 = vmul.f32 0.995, %v5411_v13 }
  0x13   :  { %4972 = vmatpush3.bf16.xpose.msk.msra.mxu1 %vm5400_vm1, %v4959_v12  ;;  %44 = vxpose.xlu0.b32.cont [2/4] (short) (narrow) %v5396_v8, 16 }
  0x14   :  { %4975 = vmatprep.subr.msk.bf16.mxu1 %vm5400_vm1, %v4963_v14  ;;  %4962 = vmatpush3.bf16.msra.mxu0 %v4959_v12 }
  0x15   :  { %4964 = vmatprep.subr.bf16.mxu0 %v4963_v14 }
  0x17   :  { %45 = vxpose.xlu0.b32.cont [3/4] (short) (narrow) %v5404_v11, 16 }
  0x18   :  { %4966 = vmatpush3.bf16.msra.mxu0 %v4963_v14 }
  0x19   :  { %4980 = vmatprep.subr.bf16.mxu0 %v4979_v17 }
  0x1b   :  { %4978 = vmatpush3.bf16.xpose.msk.msra.mxu1 %vm5400_vm1, %v4963_v14  ;;  %46 = vxpose.xlu0.b32.end [4/4] (short) (narrow) %v5411_v13, 16 }
  0x22   :  { %4527 = vmatmul.mubr.msk.f32.vlgmr.msra.gmra.mrb[0].mxu1 %vm157_vm0, %v5396_v8 }
  0x23   :  { %4529 = vmatprep.mubr.msk.f32.mxu1 %vm157_vm0, %v5404_v11 }
  0x26   :  { %4530 = vmatmul.mubr.msk.f32.gmra.mrb[2].mxu1 %vm157_vm0, %v5411_v13 }
  0x8f   :  { %v59_v18 = vpop.trf.xlu0 }
  0x90   :  { %4515 = vmatprep.mubr.msk.f32.mxu0 %vm75_vm2, %v59_v18 }
  0x93   :  { %v60_v19 = vpop.trf.xlu0 }
  0x94   :  { %4516 = vmatmul.mubr.msk.f32.vlgmr.msra.gmra.mrb[0].mxu0 %vm75_vm2, %v60_v19 }
  0x95   :  { %4982 = vmatpush3.bf16.msra.mxu0 %v4979_v17  ;;  %4536 = vmatprep.mubr.msk.f32.mxu0 %vm157_vm0, %v5394_v6 }
  0x96   :  { %4984 = vmatprep.subr.bf16.mxu0 %v4959_v12 }
  0x98   :  { %4537 = vmatmul.mubr.msk.f32.vlgmr.msra.gmra.mrb[2].mxu0 %vm157_vm0, %v5396_v8 }
  0x99   :  { %4986 = vmatpush3.bf16.msra.mxu0 %v4959_v12  ;;  %4539 = vmatprep.mubr.msk.f32.mxu0 %vm157_vm0, %v5404_v11 }
  0x9a   :  { %4988 = vmatprep.subr.bf16.mxu0 %v4963_v14 }
  0x9c   :  { %4540 = vmatmul.mubr.msk.f32.gmra.mrb[4].mxu0 %vm157_vm0, %v5411_v13 }
  0x9d   :  { %4990 = vmatpush3.bf16.msra.mxu0 %v4963_v14 }
  0xf5   :  { %v4528_v20 = vpop.f32.mrb[0].mxu1 }
  0xf6   :  { %v236_v21 = vpop.f32.mrb[1].mxu1 }
  0xf7   :  { %4550 = vmatprep.mubr.msk.f32.mxu0 %vm75_vm2, %v236_v21 }
  0xf8   :  { %4551 = vmatmul.mubr.msk.f32.vlgmr.msra.gmra.mrb[6].mxu0 %vm75_vm2, %v4528_v20 }
  0xf9   :  { %v4531_v22 = vpop.f32.mrb[2].mxu1 }
  0xfa   :  { %v246_v23 = vpop.f32.mrb[3].mxu1 }
  0xfb   :  { %4553 = vmatprep.mubr.msk.f32.mxu0 %vm75_vm2, %v246_v23 }
  0xfc   :  { %4554 = vmatmul.mubr.msk.f32.gmra.mrb[8].mxu0 %vm75_vm2, %v4531_v22 }
 0x167   :  { %v4517_v25 = vpop.f32.mrb[0].mxu0 }
 0x168   :  { %v452_v27 = vmul.f32 3.125e-05, %v4517_v25  ;;  %v148_v28 = vpop.f32.mrb[1].mxu0 }
 0x169   :  { %v451_v29 = vmul.f32 3.125e-05, %v148_v28 }
 0x16a   :  { %v5452_v30 = vadd.f32 %v452_v27, %v450_v24 }
 0x16b   :  { %v5454_v31 = vadd.f32 %v451_v29, %v449_v26  ;;  %v4538_v32 = vpop.f32.mrb[2].mxu0 }
 0x16c   :  { %v321_v33 = vpop.f32.mrb[3].mxu0  ;;  %v341_v38 = vmul.f32 0.9999, %v4538_v32  ;;  %v880_v23 = vmul.f32 0.9999, %v5452_v30 }
 0x16d   :  { %v5458_v34 = vpack.c.bf16 %v5452_v30, %v5454_v31  ;;  %v340_v41 = vmul.f32 0.9999, %v321_v33  ;;  %v879_v26 = vmul.f32 0.9999, %v5454_v31 }
 0x16f   :  { %v4541_v35 = vpop.f32.mrb[4].mxu0 }
 0x170   :  { %v331_v36 = vpop.f32.mrb[5].mxu0  ;;  %v343_v46 = vmul.f32 0.9999, %v4541_v35 }
 0x171   :  { %v342_v50 = vmul.f32 0.9999, %v331_v36 }
 0x1cb   :  { %v4552_v37 = vpop.f32.mrb[6].mxu0 }
 0x1cc   :  { %v442_v39 = vmul.f32 3.125e-05, %v4552_v37  ;;  %v422_v40 = vpop.f32.mrb[7].mxu0 }
 0x1cd   :  { %v441_v42 = vmul.f32 3.125e-05, %v422_v40 }
 0x1ce   :  { %v446_v43 = vadd.f32 %v442_v39, %v341_v38 }
 0x1cf   :  { %v445_v44 = vadd.f32 %v441_v42, %v340_v41  ;;  %v4555_v45 = vpop.f32.mrb[8].mxu0 }
 0x1d0   :  { %v460_v47 = vadd.f32 %v446_v43, %v5378_v1  ;;  %v444_v48 = vmul.f32 3.125e-05, %v4555_v45  ;;  %v432_v49 = vpop.f32.mrb[9].mxu0 }
 0x1d1   :  { %v459_v51 = vadd.f32 %v445_v44, %v5373_v0  ;;  %v443_v52 = vmul.f32 3.125e-05, %v432_v49 }
 0x1d2   :  { %5264 = vtanh.f32 %v460_v47  ;;  %v448_v53 = vadd.f32 %v444_v48, %v343_v46 }
 0x1d3   :  { %5266 = vtanh.f32 %v459_v51  ;;  %v447_v54 = vadd.f32 %v443_v52, %v342_v50 }
 0x1d4   :  { %v462_v55 = vadd.f32 %v448_v53, %v5389_v3 }
 0x1d5   :  { %v461_v56 = vadd.f32 %v447_v54, %v5384_v2 }
 0x1d6   :  { %5268 = vtanh.f32 %v462_v55 }
 0x1d7   :  { %5270 = vtanh.f32 %v461_v56 }
 0x1dc   :  { %v5265_v58 = vpop.eup %5264 }
 0x1dd   :  { %v5267_v60 = vpop.eup %5266  ;;  %v468_v61 = vmul.f32 0.01, %v5265_v58 }
 0x1de   :  { %v467_v62 = vmul.f32 0.01, %v5267_v60 }
 0x1df   :  { %v5466_v63 = vadd.f32 %v468_v61, %v456_v57 }
 0x1e0   :  { %v5269_v5 = vpop.eup %5268  ;;  %v5469_v7 = vadd.f32 %v467_v62, %v455_v59 }
 0x1e1   :  { %v5271_v12 = vpop.eup %5270  ;;  %v470_v14 = vmul.f32 0.01, %v5269_v5  ;;  %v886_v57 = vmul.f32 0.995, %v5466_v63 }
 0x1e2   :  { %v469_v15 = vmul.f32 0.01, %v5271_v12  ;;  %475 = vxpose.xlu1.b32.start [1/4] (short) (narrow) %v5469_v7, 16  ;;  %4575 = vmatprep.mubr.msk.f32.mxu0 %vm157_vm0, %v5469_v7  ;;  %v4991_v6 = vpack.c.bf16 %v5466_v63, %v5469_v7  ;;  %v885_v59 = vmul.f32 0.995, %v5469_v7 }
 0x1e3   :  { %v5477_v8 = vadd.f32 %v470_v14, %v458_v4 }
 0x1e4   :  { %v5479_v16 = vadd.f32 %v469_v15, %v457_v9  ;;  %4992 = vmatprep.subr.bf16.mxu1 %v4991_v6  ;;  %5001 = vmatprep.subr.msk.bf16.mxu0 %vm5400_vm1, %v4991_v6 }
 0x1e5   :  { %4994 = vmatpush3.bf16.msra.mxu1 %v4991_v6  ;;  %5004 = vmatpush3.bf16.xpose.msk.msra.mxu0 %vm5400_vm1, %v4991_v6  ;;  %v888_v9 = vmul.f32 0.995, %v5477_v8 }
 0x1e6   :  { %476 = vxpose.xlu1.b32.cont [2/4] (short) (narrow) %v5466_v63, 16  ;;  %v4995_v11 = vpack.c.bf16 %v5477_v8, %v5479_v16  ;;  %v887_v14 = vmul.f32 0.995, %v5479_v16 }
 0x1e8   :  { %4996 = vmatprep.subr.bf16.mxu1 %v4995_v11  ;;  %5007 = vmatprep.subr.msk.bf16.mxu0 %vm5400_vm1, %v4995_v11 }
 0x1e9   :  { %4998 = vmatpush3.bf16.msra.mxu1 %v4995_v11 }
 0x1ea   :  { %477 = vxpose.xlu1.b32.cont [3/4] (short) (narrow) %v5479_v16, 16  ;;  %5012 = vmatprep.subr.bf16.mxu1 %v5458_v34 }
 0x1ed   :  { %5010 = vmatpush3.bf16.xpose.msk.msra.mxu0 %vm5400_vm1, %v4995_v11 }
 0x1ee   :  { %478 = vxpose.xlu1.b32.end [4/4] (short) (narrow) %v5477_v8, 16 }
 0x1f4   :  { %4576 = vmatmul.mubr.msk.f32.vlgmr.msra.gmra.mrb[10].mxu0 %vm157_vm0, %v5466_v63 }
 0x1f5   :  { %4578 = vmatprep.mubr.msk.f32.mxu0 %vm157_vm0, %v5479_v16 }
 0x1f8   :  { %4579 = vmatmul.mubr.msk.f32.gmra.mrb[12].mxu0 %vm157_vm0, %v5477_v8 }
 0x262   :  { %v491_v13 = vpop.trf.xlu1 }
 0x263   :  { %4564 = vmatprep.mubr.msk.f32.mxu1 %vm75_vm2, %v491_v13 }
 0x266   :  { %v492_v17 = vpop.trf.xlu1 }
 0x267   :  { %4565 = vmatmul.mubr.msk.f32.vlgmr.msra.gmra.mrb[4].mxu1 %vm75_vm2, %v492_v17 }
 0x268   :  { %5014 = vmatpush3.bf16.msra.mxu1 %v5458_v34  ;;  %4585 = vmatprep.mubr.msk.f32.mxu1 %vm157_vm0, %v5469_v7 }
 0x269   :  { %5016 = vmatprep.subr.bf16.mxu1 %v4991_v6 }
 0x26b   :  { %4586 = vmatmul.mubr.msk.f32.vlgmr.msra.gmra.mrb[6].mxu1 %vm157_vm0, %v5466_v63 }
 0x26c   :  { %5018 = vmatpush3.bf16.msra.mxu1 %v4991_v6  ;;  %4588 = vmatprep.mubr.msk.f32.mxu1 %vm157_vm0, %v5479_v16 }
 0x26d   :  { %5020 = vmatprep.subr.bf16.mxu1 %v4995_v11 }
 0x26f   :  { %4589 = vmatmul.mubr.msk.f32.gmra.mrb[8].mxu1 %vm157_vm0, %v5477_v8 }
 0x270   :  { %5022 = vmatpush3.bf16.msra.mxu1 %v4995_v11 }
 0x2c7   :  { %v4577_v18 = vpop.f32.mrb[10].mxu0 }
 0x2c8   :  { %v666_v19 = vpop.f32.mrb[11].mxu0 }
 0x2c9   :  { %4599 = vmatprep.mubr.msk.f32.mxu1 %vm75_vm2, %v666_v19 }
 0x2ca   :  { %4600 = vmatmul.mubr.msk.f32.vlgmr.msra.gmra.mrb[10].mxu1 %vm75_vm2, %v4577_v18 }
 0x2cb   :  { %v4580_v20 = vpop.f32.mrb[12].mxu0 }
 0x2cc   :  { %v676_v21 = vpop.f32.mrb[13].mxu0 }
 0x2cd   :  { %4602 = vmatprep.mubr.msk.f32.mxu1 %vm75_vm2, %v676_v21 }
 0x2ce   :  { %4603 = vmatmul.mubr.msk.f32.gmra.mrb[12].mxu1 %vm75_vm2, %v4580_v20 }
 0x33a   :  { %v4566_v22 = vpop.f32.mrb[4].mxu1 }
 0x33b   :  { %v882_v24 = vmul.f32 3.125e-05, %v4566_v22  ;;  %v579_v25 = vpop.f32.mrb[5].mxu1 }
 0x33c   :  { %v881_v27 = vmul.f32 3.125e-05, %v579_v25 }
 0x33d   :  { %v5518_v28 = vadd.f32 %v882_v24, %v880_v23 }
 0x33e   :  { %v5520_v29 = vadd.f32 %v881_v27, %v879_v26  ;;  %v4587_v32 = vpop.f32.mrb[6].mxu1 }
 0x33f   :  { %v751_v33 = vpop.f32.mrb[7].mxu1  ;;  %v771_v38 = vmul.f32 0.9999, %v4587_v32  ;;  %v1310_v21 = vmul.f32 0.9999, %v5518_v28 }
 0x340   :  { %v5524_v34 = vpack.c.bf16 %v5518_v28, %v5520_v29  ;;  %v770_v40 = vmul.f32 0.9999, %v751_v33  ;;  %v1309_v24 = vmul.f32 0.9999, %v5520_v29 }
 0x342   :  { %v4590_v35 = vpop.f32.mrb[8].mxu1 }
 0x343   :  { %v761_v36 = vpop.f32.mrb[9].mxu1  ;;  %v773_v44 = vmul.f32 0.9999, %v4590_v35 }
 0x344   :  { %v772_v48 = vmul.f32 0.9999, %v761_v36 }
 0x39d   :  { %v4601_v37 = vpop.f32.mrb[10].mxu1 }
 0x39e   :  { %v872_v30 = vmul.f32 3.125e-05, %v4601_v37  ;;  %v852_v39 = vpop.f32.mrb[11].mxu1 }
 0x39f   :  { %v871_v41 = vmul.f32 3.125e-05, %v852_v39 }
 0x3a0   :  { %v876_v31 = vadd.f32 %v872_v30, %v771_v38 }
 0x3a1   :  { %v875_v42 = vadd.f32 %v871_v41, %v770_v40  ;;  %v4604_v43 = vpop.f32.mrb[12].mxu1 }
 0x3a2   :  { %v890_v45 = vadd.f32 %v876_v31, %v5378_v1  ;;  %v874_v46 = vmul.f32 3.125e-05, %v4604_v43  ;;  %v862_v47 = vpop.f32.mrb[13].mxu1 }
 0x3a3   :  { %v889_v49 = vadd.f32 %v875_v42, %v5373_v0  ;;  %v873_v50 = vmul.f32 3.125e-05, %v862_v47 }
 0x3a4   :  { %5272 = vtanh.f32 %v890_v45  ;;  %v878_v51 = vadd.f32 %v874_v46, %v773_v44 }
 0x3a5   :  { %5274 = vtanh.f32 %v889_v49  ;;  %v877_v52 = vadd.f32 %v873_v50, %v772_v48 }
 0x3a6   :  { %v892_v53 = vadd.f32 %v878_v51, %v5389_v3 }
 0x3a7   :  { %v891_v54 = vadd.f32 %v877_v52, %v5384_v2 }
 0x3a8   :  { %5276 = vtanh.f32 %v892_v53 }
 0x3a9   :  { %5278 = vtanh.f32 %v891_v54 }
 0x3ae   :  { %v5273_v55 = vpop.eup %5272 }
 0x3af   :  { %v5275_v56 = vpop.eup %5274  ;;  %v898_v58 = vmul.f32 0.01, %v5273_v55 }
 0x3b0   :  { %v897_v60 = vmul.f32 0.01, %v5275_v56 }
 0x3b1   :  { %v5532_v61 = vadd.f32 %v898_v58, %v886_v57 }
 0x3b2   :  { %v5277_v62 = vpop.eup %5276  ;;  %v5534_v4 = vadd.f32 %v897_v60, %v885_v59 }
 0x3b3   :  { %v5279_v5 = vpop.eup %5278  ;;  %v900_v12 = vmul.f32 0.01, %v5277_v62  ;;  %v1316_v55 = vmul.f32 0.995, %v5532_v61 }
 0x3b4   :  { %v899_v15 = vmul.f32 0.01, %v5279_v5  ;;  %905 = vxpose.xlu0.b32.start [1/4] (short) (narrow) %v5534_v4, 16  ;;  %4624 = vmatprep.mubr.msk.f32.mxu1 %vm157_vm0, %v5534_v4  ;;  %v5023_v63 = vpack.c.bf16 %v5532_v61, %v5534_v4  ;;  %v1315_v57 = vmul.f32 0.995, %v5534_v4 }
 0x3b5   :  { %v5543_v7 = vadd.f32 %v900_v12, %v888_v9 }
 0x3b6   :  { %v5545_v6 = vadd.f32 %v899_v15, %v887_v14  ;;  %5024 = vmatprep.subr.bf16.mxu0 %v5023_v63  ;;  %5033 = vmatprep.subr.msk.bf16.mxu1 %vm5400_vm1, %v5023_v63 }
 0x3b7   :  { %5026 = vmatpush3.bf16.msra.mxu0 %v5023_v63  ;;  %5036 = vmatpush3.bf16.xpose.msk.msra.mxu1 %vm5400_vm1, %v5023_v63  ;;  %v1318_v9 = vmul.f32 0.995, %v5543_v7 }
 0x3b8   :  { %906 = vxpose.xlu0.b32.cont [2/4] (short) (narrow) %v5532_v61, 16  ;;  %v5027_v8 = vpack.c.bf16 %v5543_v7, %v5545_v6  ;;  %v1317_v14 = vmul.f32 0.995, %v5545_v6 }
 0x3ba   :  { %5028 = vmatprep.subr.bf16.mxu0 %v5027_v8  ;;  %5039 = vmatprep.subr.msk.bf16.mxu1 %vm5400_vm1, %v5027_v8 }
 0x3bb   :  { %5030 = vmatpush3.bf16.msra.mxu0 %v5027_v8 }
 0x3bc   :  { %907 = vxpose.xlu0.b32.cont [3/4] (short) (narrow) %v5545_v6, 16  ;;  %5044 = vmatprep.subr.bf16.mxu0 %v5524_v34 }
 0x3bf   :  { %5042 = vmatpush3.bf16.xpose.msk.msra.mxu1 %vm5400_vm1, %v5027_v8 }
 0x3c0   :  { %908 = vxpose.xlu0.b32.end [4/4] (short) (narrow) %v5543_v7, 16 }
 0x3c6   :  { %4625 = vmatmul.mubr.msk.f32.vlgmr.msra.gmra.mrb[14].mxu1 %vm157_vm0, %v5532_v61 }
 0x3c7   :  { %4627 = vmatprep.mubr.msk.f32.mxu1 %vm157_vm0, %v5545_v6 }
 0x3ca   :  { %4628 = vmatmul.mubr.msk.f32.gmra.mrb[16].mxu1 %vm157_vm0, %v5543_v7 }
 0x434   :  { %v921_v16 = vpop.trf.xlu0 }
 0x435   :  { %4613 = vmatprep.mubr.msk.f32.mxu0 %vm75_vm2, %v921_v16 }
 0x438   :  { %v922_v11 = vpop.trf.xlu0 }
 0x439   :  { %4614 = vmatmul.mubr.msk.f32.vlgmr.msra.gmra.mrb[14].mxu0 %vm75_vm2, %v922_v11 }
 0x43a   :  { %5046 = vmatpush3.bf16.msra.mxu0 %v5524_v34  ;;  %4634 = vmatprep.mubr.msk.f32.mxu0 %vm157_vm0, %v5534_v4 }
 0x43b   :  { %5048 = vmatprep.subr.bf16.mxu0 %v5023_v63 }
 0x43d   :  { %4635 = vmatmul.mubr.msk.f32.vlgmr.msra.gmra.mrb[16].mxu0 %vm157_vm0, %v5532_v61 }
 0x43e   :  { %5050 = vmatpush3.bf16.msra.mxu0 %v5023_v63  ;;  %4637 = vmatprep.mubr.msk.f32.mxu0 %vm157_vm0, %v5545_v6 }
 0x43f   :  { %5052 = vmatprep.subr.bf16.mxu0 %v5027_v8 }
 0x441   :  { %4638 = vmatmul.mubr.msk.f32.gmra.mrb[18].mxu0 %vm157_vm0, %v5543_v7 }
 0x442   :  { %5054 = vmatpush3.bf16.msra.mxu0 %v5027_v8 }
 0x499   :  { %v4626_v13 = vpop.f32.mrb[14].mxu1 }
 0x49a   :  { %v1096_v17 = vpop.f32.mrb[15].mxu1 }
 0x49b   :  { %4648 = vmatprep.mubr.msk.f32.mxu0 %vm75_vm2, %v1096_v17 }
 0x49c   :  { %4649 = vmatmul.mubr.msk.f32.vlgmr.msra.gmra.mrb[20].mxu0 %vm75_vm2, %v4626_v13 }
 0x49d   :  { %v4629_v18 = vpop.f32.mrb[16].mxu1 }
 0x49e   :  { %v1106_v19 = vpop.f32.mrb[17].mxu1 }
 0x49f   :  { %4651 = vmatprep.mubr.msk.f32.mxu0 %vm75_vm2, %v1106_v19 }
 0x4a0   :  { %4652 = vmatmul.mubr.msk.f32.gmra.mrb[22].mxu0 %vm75_vm2, %v4629_v18 }
 0x50c   :  { %v4615_v20 = vpop.f32.mrb[14].mxu0 }
 0x50d   :  { %v1312_v22 = vmul.f32 3.125e-05, %v4615_v20  ;;  %v1009_v23 = vpop.f32.mrb[15].mxu0 }
 0x50e   :  { %v1311_v25 = vmul.f32 3.125e-05, %v1009_v23 }
 0x50f   :  { %v5584_v26 = vadd.f32 %v1312_v22, %v1310_v21 }
 0x510   :  { %v5586_v27 = vadd.f32 %v1311_v25, %v1309_v24  ;;  %v4636_v32 = vpop.f32.mrb[16].mxu0 }
 0x511   :  { %v1181_v33 = vpop.f32.mrb[17].mxu0  ;;  %v1201_v38 = vmul.f32 0.9999, %v4636_v32  ;;  %v1740_v19 = vmul.f32 0.9999, %v5584_v26 }
 0x512   :  { %v5590_v34 = vpack.c.bf16 %v5584_v26, %v5586_v27  ;;  %v1200_v39 = vmul.f32 0.9999, %v1181_v33  ;;  %v1739_v22 = vmul.f32 0.9999, %v5586_v27 }
 0x514   :  { %v4639_v35 = vpop.f32.mrb[18].mxu0 }
 0x515   :  { %v1191_v36 = vpop.f32.mrb[19].mxu0  ;;  %v1203_v42 = vmul.f32 0.9999, %v4639_v35 }
 0x516   :  { %v1202_v46 = vmul.f32 0.9999, %v1191_v36 }
 0x56f   :  { %v4650_v37 = vpop.f32.mrb[20].mxu0 }
 0x570   :  { %v1302_v28 = vmul.f32 3.125e-05, %v4650_v37  ;;  %v1282_v30 = vpop.f32.mrb[21].mxu0 }
 0x571   :  { %v1301_v40 = vmul.f32 3.125e-05, %v1282_v30 }
 0x572   :  { %v1306_v29 = vadd.f32 %v1302_v28, %v1201_v38 }
 0x573   :  { %v1305_v41 = vadd.f32 %v1301_v40, %v1200_v39  ;;  %v4653_v31 = vpop.f32.mrb[22].mxu0 }
 0x574   :  { %v1320_v43 = vadd.f32 %v1306_v29, %v5378_v1  ;;  %v1304_v44 = vmul.f32 3.125e-05, %v4653_v31  ;;  %v1292_v45 = vpop.f32.mrb[23].mxu0 }
 0x575   :  { %v1319_v47 = vadd.f32 %v1305_v41, %v5373_v0  ;;  %v1303_v48 = vmul.f32 3.125e-05, %v1292_v45 }
 0x576   :  { %5280 = vtanh.f32 %v1320_v43  ;;  %v1308_v49 = vadd.f32 %v1304_v44, %v1203_v42 }
 0x577   :  { %5282 = vtanh.f32 %v1319_v47  ;;  %v1307_v50 = vadd.f32 %v1303_v48, %v1202_v46 }
 0x578   :  { %v1322_v51 = vadd.f32 %v1308_v49, %v5389_v3 }
 0x579   :  { %v1321_v52 = vadd.f32 %v1307_v50, %v5384_v2 }
 0x57a   :  { %5284 = vtanh.f32 %v1322_v51 }
 0x57b   :  { %5286 = vtanh.f32 %v1321_v52 }
 0x580   :  { %v5281_v53 = vpop.eup %5280 }
 0x581   :  { %v5283_v54 = vpop.eup %5282  ;;  %v1328_v56 = vmul.f32 0.01, %v5281_v53 }
 0x582   :  { %v1327_v58 = vmul.f32 0.01, %v5283_v54 }
 0x583   :  { %v5598_v59 = vadd.f32 %v1328_v56, %v1316_v55 }
 0x584   :  { %v5285_v60 = vpop.eup %5284  ;;  %v5600_v62 = vadd.f32 %v1327_v58, %v1315_v57 }
 0x585   :  { %v5287_v5 = vpop.eup %5286  ;;  %v1330_v12 = vmul.f32 0.01, %v5285_v60  ;;  %v1746_v53 = vmul.f32 0.995, %v5598_v59 }
 0x586   :  { %v1329_v15 = vmul.f32 0.01, %v5287_v5  ;;  %1335 = vxpose.xlu1.b32.start [1/4] (short) (narrow) %v5600_v62, 16  ;;  %4673 = vmatprep.mubr.msk.f32.mxu0 %vm157_vm0, %v5600_v62  ;;  %v5055_v61 = vpack.c.bf16 %v5598_v59, %v5600_v62  ;;  %v1745_v55 = vmul.f32 0.995, %v5600_v62 }
 0x587   :  { %v5609_v4 = vadd.f32 %v1330_v12, %v1318_v9 }
 0x588   :  { %v5611_v63 = vadd.f32 %v1329_v15, %v1317_v14  ;;  %5056 = vmatprep.subr.bf16.mxu1 %v5055_v61  ;;  %5065 = vmatprep.subr.msk.bf16.mxu0 %vm5400_vm1, %v5055_v61 }
 0x589   :  { %5058 = vmatpush3.bf16.msra.mxu1 %v5055_v61  ;;  %5068 = vmatpush3.bf16.xpose.msk.msra.mxu0 %vm5400_vm1, %v5055_v61  ;;  %v1748_v9 = vmul.f32 0.995, %v5609_v4 }
 0x58a   :  { %1336 = vxpose.xlu1.b32.cont [2/4] (short) (narrow) %v5598_v59, 16  ;;  %v5059_v7 = vpack.c.bf16 %v5609_v4, %v5611_v63  ;;  %v1747_v14 = vmul.f32 0.995, %v5611_v63 }
 0x58c   :  { %5060 = vmatprep.subr.bf16.mxu1 %v5059_v7  ;;  %5071 = vmatprep.subr.msk.bf16.mxu0 %vm5400_vm1, %v5059_v7 }
 0x58d   :  { %5062 = vmatpush3.bf16.msra.mxu1 %v5059_v7 }
 0x58e   :  { %1337 = vxpose.xlu1.b32.cont [3/4] (short) (narrow) %v5611_v63, 16  ;;  %5076 = vmatprep.subr.bf16.mxu1 %v5590_v34 }
 0x591   :  { %5074 = vmatpush3.bf16.xpose.msk.msra.mxu0 %vm5400_vm1, %v5059_v7 }
 0x592   :  { %1338 = vxpose.xlu1.b32.end [4/4] (short) (narrow) %v5609_v4, 16 }
 0x598   :  { %4674 = vmatmul.mubr.msk.f32.vlgmr.msra.gmra.mrb[24].mxu0 %vm157_vm0, %v5598_v59 }
 0x599   :  { %4676 = vmatprep.mubr.msk.f32.mxu0 %vm157_vm0, %v5611_v63 }
 0x59c   :  { %4677 = vmatmul.mubr.msk.f32.gmra.mrb[26].mxu0 %vm157_vm0, %v5609_v4 }
 0x606   :  { %v1351_v6 = vpop.trf.xlu1 }
 0x607   :  { %4662 = vmatprep.mubr.msk.f32.mxu1 %vm75_vm2, %v1351_v6 }
 0x60a   :  { %v1352_v8 = vpop.trf.xlu1 }
 0x60b   :  { %4663 = vmatmul.mubr.msk.f32.vlgmr.msra.gmra.mrb[18].mxu1 %vm75_vm2, %v1352_v8 }
 0x60c   :  { %5078 = vmatpush3.bf16.msra.mxu1 %v5590_v34  ;;  %4683 = vmatprep.mubr.msk.f32.mxu1 %vm157_vm0, %v5600_v62 }
 0x60d   :  { %5080 = vmatprep.subr.bf16.mxu1 %v5055_v61 }
 0x60f   :  { %4684 = vmatmul.mubr.msk.f32.vlgmr.msra.gmra.mrb[20].mxu1 %vm157_vm0, %v5598_v59 }
 0x610   :  { %5082 = vmatpush3.bf16.msra.mxu1 %v5055_v61  ;;  %4686 = vmatprep.mubr.msk.f32.mxu1 %vm157_vm0, %v5611_v63 }
 0x611   :  { %5084 = vmatprep.subr.bf16.mxu1 %v5059_v7 }
 0x613   :  { %4687 = vmatmul.mubr.msk.f32.gmra.mrb[22].mxu1 %vm157_vm0, %v5609_v4 }
 0x614   :  { %5086 = vmatpush3.bf16.msra.mxu1 %v5059_v7 }
 0x66b   :  { %v4675_v16 = vpop.f32.mrb[24].mxu0 }
 0x66c   :  { %v1526_v11 = vpop.f32.mrb[25].mxu0 }
 0x66d   :  { %4697 = vmatprep.mubr.msk.f32.mxu1 %vm75_vm2, %v1526_v11 }
 0x66e   :  { %4698 = vmatmul.mubr.msk.f32.vlgmr.msra.gmra.mrb[24].mxu1 %vm75_vm2, %v4675_v16 }
 0x66f   :  { %v4678_v13 = vpop.f32.mrb[26].mxu0 }
 0x670   :  { %v1536_v17 = vpop.f32.mrb[27].mxu0 }
 0x671   :  { %4700 = vmatprep.mubr.msk.f32.mxu1 %vm75_vm2, %v1536_v17 }
 0x672   :  { %4701 = vmatmul.mubr.msk.f32.gmra.mrb[26].mxu1 %vm75_vm2, %v4678_v13 }
 0x6de   :  { %v4664_v18 = vpop.f32.mrb[18].mxu1 }
 0x6df   :  { %v1742_v20 = vmul.f32 3.125e-05, %v4664_v18  ;;  %v1439_v21 = vpop.f32.mrb[19].mxu1 }
 0x6e0   :  { %v1741_v23 = vmul.f32 3.125e-05, %v1439_v21 }
 0x6e1   :  { %v5650_v24 = vadd.f32 %v1742_v20, %v1740_v19 }
 0x6e2   :  { %v5652_v25 = vadd.f32 %v1741_v23, %v1739_v22  ;;  %v4685_v32 = vpop.f32.mrb[20].mxu1 }
 0x6e3   :  { %v1611_v33 = vpop.f32.mrb[21].mxu1  ;;  %v1631_v38 = vmul.f32 0.9999, %v4685_v32  ;;  %v2170_v17 = vmul.f32 0.9999, %v5650_v24 }
 0x6e4   :  { %v5656_v34 = vpack.c.bf16 %v5650_v24, %v5652_v25  ;;  %v1630_v30 = vmul.f32 0.9999, %v1611_v33  ;;  %v2169_v20 = vmul.f32 0.9999, %v5652_v25 }
 0x6e6   :  { %v4688_v35 = vpop.f32.mrb[22].mxu1 }
 0x6e7   :  { %v1621_v36 = vpop.f32.mrb[23].mxu1  ;;  %v1633_v41 = vmul.f32 0.9999, %v4688_v35 }
 0x6e8   :  { %v1632_v44 = vmul.f32 0.9999, %v1621_v36 }
 0x741   :  { %v4699_v37 = vpop.f32.mrb[24].mxu1 }
 0x742   :  { %v1732_v26 = vmul.f32 3.125e-05, %v4699_v37  ;;  %v1712_v28 = vpop.f32.mrb[25].mxu1 }
 0x743   :  { %v1731_v39 = vmul.f32 3.125e-05, %v1712_v28 }
 0x744   :  { %v1736_v27 = vadd.f32 %v1732_v26, %v1631_v38 }
 0x745   :  { %v1735_v40 = vadd.f32 %v1731_v39, %v1630_v30  ;;  %v4702_v29 = vpop.f32.mrb[26].mxu1 }
 0x746   :  { %v1750_v31 = vadd.f32 %v1736_v27, %v5378_v1  ;;  %v1734_v42 = vmul.f32 3.125e-05, %v4702_v29  ;;  %v1722_v43 = vpop.f32.mrb[27].mxu1 }
 0x747   :  { %v1749_v45 = vadd.f32 %v1735_v40, %v5373_v0  ;;  %v1733_v46 = vmul.f32 3.125e-05, %v1722_v43 }
 0x748   :  { %5288 = vtanh.f32 %v1750_v31  ;;  %v1738_v47 = vadd.f32 %v1734_v42, %v1633_v41 }
 0x749   :  { %5290 = vtanh.f32 %v1749_v45  ;;  %v1737_v48 = vadd.f32 %v1733_v46, %v1632_v44 }
 0x74a   :  { %v1752_v49 = vadd.f32 %v1738_v47, %v5389_v3 }
 0x74b   :  { %v1751_v50 = vadd.f32 %v1737_v48, %v5384_v2 }
 0x74c   :  { %5292 = vtanh.f32 %v1752_v49 }
 0x74d   :  { %5294 = vtanh.f32 %v1751_v50 }
 0x752   :  { %v5289_v51 = vpop.eup %5288 }
 0x753   :  { %v5291_v52 = vpop.eup %5290  ;;  %v1758_v54 = vmul.f32 0.01, %v5289_v51 }
 0x754   :  { %v1757_v56 = vmul.f32 0.01, %v5291_v52 }
 0x755   :  { %v5664_v57 = vadd.f32 %v1758_v54, %v1746_v53 }
 0x756   :  { %v5293_v58 = vpop.eup %5292  ;;  %v5666_v60 = vadd.f32 %v1757_v56, %v1745_v55 }
 0x757   :  { %v5295_v5 = vpop.eup %5294  ;;  %v1760_v12 = vmul.f32 0.01, %v5293_v58 }
 0x758   :  { %v1759_v15 = vmul.f32 0.01, %v5295_v5  ;;  %1765 = vxpose.xlu0.b32.start [1/4] (short) (narrow) %v5666_v60, 16  ;;  %4722 = vmatprep.mubr.msk.f32.mxu1 %vm157_vm0, %v5666_v60  ;;  %v5087_v59 = vpack.c.bf16 %v5664_v57, %v5666_v60  ;;  %v2175_v52 = vmul.f32 0.995, %v5666_v60 }
 0x759   :  { %v5675_v62 = vadd.f32 %v1760_v12, %v1748_v9 }
 0x75a   :  { %v5677_v61 = vadd.f32 %v1759_v15, %v1747_v14  ;;  %5088 = vmatprep.subr.bf16.mxu0 %v5087_v59  ;;  %5097 = vmatprep.subr.msk.bf16.mxu1 %vm5400_vm1, %v5087_v59 }
 0x75b   :  { %5090 = vmatpush3.bf16.msra.mxu0 %v5087_v59  ;;  %5100 = vmatpush3.bf16.xpose.msk.msra.mxu1 %vm5400_vm1, %v5087_v59 }
 0x75c   :  { %1766 = vxpose.xlu0.b32.cont [2/4] (short) (narrow) %v5664_v57, 16  ;;  %v5091_v4 = vpack.c.bf16 %v5675_v62, %v5677_v61 }
 0x75e   :  { %5092 = vmatprep.subr.bf16.mxu0 %v5091_v4  ;;  %5103 = vmatprep.subr.msk.bf16.mxu1 %vm5400_vm1, %v5091_v4 }
 0x75f   :  { %5094 = vmatpush3.bf16.msra.mxu0 %v5091_v4 }
 0x760   :  { %1767 = vxpose.xlu0.b32.cont [3/4] (short) (narrow) %v5677_v61, 16  ;;  %5108 = vmatprep.subr.bf16.mxu0 %v5656_v34 }
 0x763   :  { %5106 = vmatpush3.bf16.xpose.msk.msra.mxu1 %vm5400_vm1, %v5091_v4 }
 0x764   :  { %1768 = vxpose.xlu0.b32.end [4/4] (short) (narrow) %v5675_v62, 16 }
 0x76a   :  { %4723 = vmatmul.mubr.msk.f32.vlgmr.msra.gmra.mrb[28].mxu1 %vm157_vm0, %v5664_v57 }
 0x76b   :  { %4725 = vmatprep.mubr.msk.f32.mxu1 %vm157_vm0, %v5677_v61 }
 0x76e   :  { %4726 = vmatmul.mubr.msk.f32.gmra.mrb[30].mxu1 %vm157_vm0, %v5675_v62 }
 0x7d8   :  { %v1781_v63 = vpop.trf.xlu0 }
 0x7d9   :  { %4711 = vmatprep.mubr.msk.f32.mxu0 %vm75_vm2, %v1781_v63 }
 0x7dc   :  { %v1782_v7 = vpop.trf.xlu0 }
 0x7dd   :  { %4712 = vmatmul.mubr.msk.f32.vlgmr.msra.gmra.mrb[28].mxu0 %vm75_vm2, %v1782_v7 }
 0x7de   :  { %5110 = vmatpush3.bf16.msra.mxu0 %v5656_v34  ;;  %4732 = vmatprep.mubr.msk.f32.mxu0 %vm157_vm0, %v5666_v60 }
 0x7df   :  { %5112 = vmatprep.subr.bf16.mxu0 %v5087_v59 }
 0x7e1   :  { %4733 = vmatmul.mubr.msk.f32.vlgmr.msra.gmra.mrb[30].mxu0 %vm157_vm0, %v5664_v57 }
 0x7e2   :  { %5114 = vmatpush3.bf16.msra.mxu0 %v5087_v59  ;;  %4735 = vmatprep.mubr.msk.f32.mxu0 %vm157_vm0, %v5677_v61 }
 0x7e3   :  { %5116 = vmatprep.subr.bf16.mxu0 %v5091_v4 }
 0x7e5   :  { %4736 = vmatmul.mubr.msk.f32.gmra.mrb[32].mxu0 %vm157_vm0, %v5675_v62 }
 0x7e6   :  { %5118 = vmatpush3.bf16.msra.mxu0 %v5091_v4 }
 0x83d   :  { %v4724_v6 = vpop.f32.mrb[28].mxu1 }
 0x83e   :  { %v1956_v8 = vpop.f32.mrb[29].mxu1 }
 0x83f   :  { %4746 = vmatprep.mubr.msk.f32.mxu0 %vm75_vm2, %v1956_v8 }
 0x840   :  { %4747 = vmatmul.mubr.msk.f32.vlgmr.msra.gmra.mrb[34].mxu0 %vm75_vm2, %v4724_v6 }
 0x841   :  { %v4727_v16 = vpop.f32.mrb[30].mxu1 }
 0x842   :  { %v1966_v11 = vpop.f32.mrb[31].mxu1 }
 0x843   :  { %4749 = vmatprep.mubr.msk.f32.mxu0 %vm75_vm2, %v1966_v11 }
 0x844   :  { %4750 = vmatmul.mubr.msk.f32.gmra.mrb[36].mxu0 %vm75_vm2, %v4727_v16 }
 0x8b0   :  { %v4713_v13 = vpop.f32.mrb[28].mxu0 }
 0x8b1   :  { %v2172_v18 = vmul.f32 3.125e-05, %v4713_v13  ;;  %v1869_v19 = vpop.f32.mrb[29].mxu0 }
 0x8b2   :  { %v2171_v21 = vmul.f32 3.125e-05, %v1869_v19 }
 0x8b3   :  { %v5716_v22 = vadd.f32 %v2172_v18, %v2170_v17 }
 0x8b4   :  { %v5718_v23 = vadd.f32 %v2171_v21, %v2169_v20  ;;  %v4734_v32 = vpop.f32.mrb[30].mxu0 }
 0x8b5   :  { %v2041_v33 = vpop.f32.mrb[31].mxu0  ;;  %v2061_v38 = vmul.f32 0.9999, %v4734_v32  ;;  %v2600_v7 = vmul.f32 0.9999, %v5716_v22 }
 0x8b6   :  { %v5722_v34 = vpack.c.bf16 %v5716_v22, %v5718_v23  ;;  %v2060_v28 = vmul.f32 0.9999, %v2041_v33  ;;  %v2599_v16 = vmul.f32 0.9999, %v5718_v23 }
 0x8b8   :  { %v4737_v35 = vpop.f32.mrb[32].mxu0 }
 0x8b9   :  { %v2051_v36 = vpop.f32.mrb[33].mxu0  ;;  %v2063_v40 = vmul.f32 0.9999, %v4737_v35 }
 0x8ba   :  { %v2062_v42 = vmul.f32 0.9999, %v2051_v36 }
 0x913   :  { %v4748_v37 = vpop.f32.mrb[34].mxu0 }
 0x914   :  { %v2162_v24 = vmul.f32 3.125e-05, %v4748_v37  ;;  %v2142_v26 = vpop.f32.mrb[35].mxu0 }
 0x915   :  { %v2161_v30 = vmul.f32 3.125e-05, %v2142_v26 }
 0x916   :  { %v2166_v25 = vadd.f32 %v2162_v24, %v2061_v38 }
 0x917   :  { %v2165_v39 = vadd.f32 %v2161_v30, %v2060_v28  ;;  %v4751_v27 = vpop.f32.mrb[36].mxu0  ;;  %v5793_v28 = vld [vmem:[%s6046_s0 + $0x8] sm:$0xff] }
 0x918   :  { %v2180_v29 = vadd.f32 %v2166_v25, %v5378_v1  ;;  %v2164_v41 = vmul.f32 3.125e-05, %v4751_v27  ;;  %v2152_v31 = vpop.f32.mrb[37].mxu0  ;;  %v2176_v1 = vmul.f32 0.995, %v5664_v57 }
 0x919   :  { %v2179_v43 = vadd.f32 %v2165_v39, %v5373_v0  ;;  %v2163_v44 = vmul.f32 3.125e-05, %v2152_v31 }
 0x91a   :  { %5296 = vtanh.f32 %v2180_v29  ;;  %v2168_v45 = vadd.f32 %v2164_v41, %v2063_v40  ;;  %v5799_v40 = vld [vmem:[%s6046_s0] sm:$0xff] }
 0x91b   :  { %5298 = vtanh.f32 %v2179_v43  ;;  %v2167_v46 = vadd.f32 %v2163_v44, %v2062_v42  ;;  %v5805_v43 = vld [vmem:[%s6046_s0 + $0x18] sm:$0xff] }
 0x91c   :  { %v2182_v47 = vadd.f32 %v2168_v45, %v5389_v3  ;;  %v2178_v3 = vmul.f32 0.995, %v5675_v62  ;;  %v5811_v45 = vld [vmem:[%s6046_s0 + $0x10] sm:$0xff] }
 0x91d   :  { %v2181_v48 = vadd.f32 %v2167_v46, %v5384_v2  ;;  %v2177_v2 = vmul.f32 0.995, %v5677_v61 }
 0x91e   :  { %5300 = vtanh.f32 %v2182_v47 }
 0x91f   :  { %5302 = vtanh.f32 %v2181_v48 }
 0x924   :  { %v5297_v49 = vpop.eup %5296 }
 0x925   :  { %v5299_v50 = vpop.eup %5298  ;;  %v2188_v51 = vmul.f32 0.01, %v5297_v49 }
 0x926   :  { %v2187_v53 = vmul.f32 0.01, %v5299_v50 }
 0x927   :  { %v5730_v0 = vadd.f32 %v2188_v51, %v2176_v1 }
 0x928   :  { %v5301_v54 = vpop.eup %5300  ;;  %v5732_v55 = vadd.f32 %v2187_v53, %v2175_v52 }
 0x929   :  { %v5303_v56 = vpop.eup %5302  ;;  %v2190_v58 = vmul.f32 0.01, %v5301_v54  ;;  %v2606_v49 = vmul.f32 0.995, %v5730_v0 }
 0x92a   :  { %v2189_v5 = vmul.f32 0.01, %v5303_v56  ;;  %2195 = vxpose.xlu1.b32.start [1/4] (short) (narrow) %v5732_v55, 16  ;;  %4771 = vmatprep.mubr.msk.f32.mxu0 %vm157_vm0, %v5732_v55  ;;  %v5119_v57 = vpack.c.bf16 %v5730_v0, %v5732_v55  ;;  %v2605_v1 = vmul.f32 0.995, %v5732_v55 }
 0x92b   :  { %v5741_v60 = vadd.f32 %v2190_v58, %v2178_v3 }
 0x92c   :  { %v5743_v9 = vadd.f32 %v2189_v5, %v2177_v2  ;;  %5120 = vmatprep.subr.bf16.mxu1 %v5119_v57  ;;  %5129 = vmatprep.subr.msk.bf16.mxu0 %vm5400_vm1, %v5119_v57 }
 0x92d   :  { %5122 = vmatpush3.bf16.msra.mxu1 %v5119_v57  ;;  %5132 = vmatpush3.bf16.xpose.msk.msra.mxu0 %vm5400_vm1, %v5119_v57  ;;  %v2608_v3 = vmul.f32 0.995, %v5741_v60 }
 0x92e   :  { %2196 = vxpose.xlu1.b32.cont [2/4] (short) (narrow) %v5730_v0, 16  ;;  %v5123_v12 = vpack.c.bf16 %v5741_v60, %v5743_v9  ;;  %v2607_v2 = vmul.f32 0.995, %v5743_v9 }
 0x930   :  { %5124 = vmatprep.subr.bf16.mxu1 %v5123_v12  ;;  %5135 = vmatprep.subr.msk.bf16.mxu0 %vm5400_vm1, %v5123_v12 }
 0x931   :  { %5126 = vmatpush3.bf16.msra.mxu1 %v5123_v12 }
 0x932   :  { %2197 = vxpose.xlu1.b32.cont [3/4] (short) (narrow) %v5743_v9, 16  ;;  %5140 = vmatprep.subr.bf16.mxu1 %v5722_v34 }
 0x935   :  { %5138 = vmatpush3.bf16.xpose.msk.msra.mxu0 %vm5400_vm1, %v5123_v12 }
 0x936   :  { %2198 = vxpose.xlu1.b32.end [4/4] (short) (narrow) %v5741_v60, 16 }
 0x93c   :  { %4772 = vmatmul.mubr.msk.f32.vlgmr.msra.gmra.mrb[38].mxu0 %vm157_vm0, %v5730_v0 }
 0x93d   :  { %4774 = vmatprep.mubr.msk.f32.mxu0 %vm157_vm0, %v5743_v9 }
 0x940   :  { %4775 = vmatmul.mubr.msk.f32.gmra.mrb[40].mxu0 %vm157_vm0, %v5741_v60 }
 0x9aa   :  { %v2211_v14 = vpop.trf.xlu1 }
 0x9ab   :  { %4760 = vmatprep.mubr.msk.f32.mxu1 %vm75_vm2, %v2211_v14 }
 0x9ae   :  { %v2212_v15 = vpop.trf.xlu1 }
 0x9af   :  { %4761 = vmatmul.mubr.msk.f32.vlgmr.msra.gmra.mrb[32].mxu1 %vm75_vm2, %v2212_v15 }
 0x9b0   :  { %5142 = vmatpush3.bf16.msra.mxu1 %v5722_v34  ;;  %4781 = vmatprep.mubr.msk.f32.mxu1 %vm157_vm0, %v5732_v55 }
 0x9b1   :  { %5144 = vmatprep.subr.bf16.mxu1 %v5119_v57 }
 0x9b3   :  { %4782 = vmatmul.mubr.msk.f32.vlgmr.msra.gmra.mrb[34].mxu1 %vm157_vm0, %v5730_v0 }
 0x9b4   :  { %5146 = vmatpush3.bf16.msra.mxu1 %v5119_v57  ;;  %4784 = vmatprep.mubr.msk.f32.mxu1 %vm157_vm0, %v5743_v9 }
 0x9b5   :  { %5148 = vmatprep.subr.bf16.mxu1 %v5123_v12 }
 0x9b7   :  { %4785 = vmatmul.mubr.msk.f32.gmra.mrb[36].mxu1 %vm157_vm0, %v5741_v60 }
 0x9b8   :  { %5150 = vmatpush3.bf16.msra.mxu1 %v5123_v12 }
 0xa0f   :  { %v4773_v59 = vpop.f32.mrb[38].mxu0 }
 0xa10   :  { %v2386_v62 = vpop.f32.mrb[39].mxu0 }
 0xa11   :  { %4795 = vmatprep.mubr.msk.f32.mxu1 %vm75_vm2, %v2386_v62 }
 0xa12   :  { %4796 = vmatmul.mubr.msk.f32.vlgmr.msra.gmra.mrb[38].mxu1 %vm75_vm2, %v4773_v59 }
 0xa13   :  { %v4776_v61 = vpop.f32.mrb[40].mxu0 }
 0xa14   :  { %v2396_v4 = vpop.f32.mrb[41].mxu0 }
 0xa15   :  { %4798 = vmatprep.mubr.msk.f32.mxu1 %vm75_vm2, %v2396_v4 }
 0xa16   :  { %4799 = vmatmul.mubr.msk.f32.gmra.mrb[40].mxu1 %vm75_vm2, %v4776_v61 }
 0xa82   :  { %v4762_v63 = vpop.f32.mrb[32].mxu1 }
 0xa83   :  { %v2602_v6 = vmul.f32 3.125e-05, %v4762_v63  ;;  %v2299_v8 = vpop.f32.mrb[33].mxu1 }
 0xa84   :  { %v2601_v11 = vmul.f32 3.125e-05, %v2299_v8 }
 0xa85   :  { %v5782_v13 = vadd.f32 %v2602_v6, %v2600_v7 }
 0xa86   :  { %v5784_v17 = vadd.f32 %v2601_v11, %v2599_v16  ;;  %v4783_v18 = vpop.f32.mrb[34].mxu1 }
 0xa87   :  { %v2471_v19 = vpop.f32.mrb[35].mxu1  ;;  %v2491_v34 = vmul.f32 0.9999, %v4783_v18  ;;  %v3030_v4 = vmul.f32 0.9999, %v5782_v13 }
 0xa88   :  { %v5788_v20 = vpack.c.bf16 %v5782_v13, %v5784_v17  ;;  %v2490_v36 = vmul.f32 0.9999, %v2471_v19  ;;  %v3029_v6 = vmul.f32 0.9999, %v5784_v17 }
 0xa8a   :  { %v4786_v21 = vpop.f32.mrb[36].mxu1 }
 0xa8b   :  { %v2481_v32 = vpop.f32.mrb[37].mxu1  ;;  %v2493_v26 = vmul.f32 0.9999, %v4786_v21 }
 0xa8c   :  { %v2492_v27 = vmul.f32 0.9999, %v2481_v32 }
 0xae5   :  { %v4797_v33 = vpop.f32.mrb[38].mxu1 }
 0xae6   :  { %v2592_v22 = vmul.f32 3.125e-05, %v4797_v33  ;;  %v2572_v35 = vpop.f32.mrb[39].mxu1 }
 0xae7   :  { %v2591_v37 = vmul.f32 3.125e-05, %v2572_v35 }
 0xae8   :  { %v2596_v23 = vadd.f32 %v2592_v22, %v2491_v34 }
 0xae9   :  { %v2595_v38 = vadd.f32 %v2591_v37, %v2490_v36  ;;  %v4800_v24 = vpop.f32.mrb[40].mxu1 }
 0xaea   :  { %v2610_v30 = vadd.f32 %v5793_v28, %v2596_v23  ;;  %v2594_v25 = vmul.f32 3.125e-05, %v4800_v24  ;;  %v2582_v39 = vpop.f32.mrb[41].mxu1 }
 0xaeb   :  { %v2609_v29 = vadd.f32 %v5799_v40, %v2595_v38  ;;  %v2593_v41 = vmul.f32 3.125e-05, %v2582_v39 }
 0xaec   :  { %5304 = vtanh.f32 %v2610_v30  ;;  %v2598_v31 = vadd.f32 %v2594_v25, %v2493_v26 }
 0xaed   :  { %5306 = vtanh.f32 %v2609_v29  ;;  %v2597_v42 = vadd.f32 %v2593_v41, %v2492_v27 }
 0xaee   :  { %v2612_v44 = vadd.f32 %v5805_v43, %v2598_v31 }
 0xaef   :  { %v2611_v46 = vadd.f32 %v5811_v45, %v2597_v42 }
 0xaf0   :  { %5308 = vtanh.f32 %v2612_v44 }
 0xaf1   :  { %5310 = vtanh.f32 %v2611_v46 }
 0xaf6   :  { %v5305_v47 = vpop.eup %5304 }
 0xaf7   :  { %v5307_v48 = vpop.eup %5306  ;;  %v2618_v50 = vmul.f32 0.01, %v5305_v47 }
 0xaf8   :  { %v2617_v51 = vmul.f32 0.01, %v5307_v48 }
 0xaf9   :  { %v5816_v52 = vadd.f32 %v2618_v50, %v2606_v49 }
 0xafa   :  { %v5309_v53 = vpop.eup %5308  ;;  %v5818_v54 = vadd.f32 %v2617_v51, %v2605_v1 }
 0xafb   :  { %v5311_v56 = vpop.eup %5310  ;;  %v2620_v58 = vmul.f32 0.01, %v5309_v53  ;;  %v3036_v47 = vmul.f32 0.995, %v5816_v52 }
 0xafc   :  { %v2619_v5 = vmul.f32 0.01, %v5311_v56  ;;  %2625 = vxpose.xlu0.b32.start [1/4] (short) (narrow) %v5818_v54, 16  ;;  %4820 = vmatprep.mubr.msk.f32.mxu1 %vm157_vm0, %v5818_v54  ;;  %v5151_v0 = vpack.c.bf16 %v5816_v52, %v5818_v54  ;;  %v3035_v49 = vmul.f32 0.995, %v5818_v54 }
 0xafd   :  { %v5827_v55 = vadd.f32 %v2620_v58, %v2608_v3 }
 0xafe   :  { %v5829_v57 = vadd.f32 %v2619_v5, %v2607_v2  ;;  %5152 = vmatprep.subr.bf16.mxu0 %v5151_v0  ;;  %5161 = vmatprep.subr.msk.bf16.mxu1 %vm5400_vm1, %v5151_v0 }
 0xaff   :  { %5154 = vmatpush3.bf16.msra.mxu0 %v5151_v0  ;;  %5164 = vmatpush3.bf16.xpose.msk.msra.mxu1 %vm5400_vm1, %v5151_v0  ;;  %v3038_v3 = vmul.f32 0.995, %v5827_v55 }
 0xb00   :  { %2626 = vxpose.xlu0.b32.cont [2/4] (short) (narrow) %v5816_v52, 16  ;;  %v5155_v60 = vpack.c.bf16 %v5827_v55, %v5829_v57  ;;  %v3037_v2 = vmul.f32 0.995, %v5829_v57 }
 0xb02   :  { %5156 = vmatprep.subr.bf16.mxu0 %v5155_v60  ;;  %5167 = vmatprep.subr.msk.bf16.mxu1 %vm5400_vm1, %v5155_v60 }
 0xb03   :  { %5158 = vmatpush3.bf16.msra.mxu0 %v5155_v60 }
 0xb04   :  { %2627 = vxpose.xlu0.b32.cont [3/4] (short) (narrow) %v5829_v57, 16  ;;  %5172 = vmatprep.subr.bf16.mxu0 %v5788_v20 }
 0xb07   :  { %5170 = vmatpush3.bf16.xpose.msk.msra.mxu1 %vm5400_vm1, %v5155_v60 }
 0xb08   :  { %2628 = vxpose.xlu0.b32.end [4/4] (short) (narrow) %v5827_v55, 16 }
 0xb0e   :  { %4821 = vmatmul.mubr.msk.f32.vlgmr.msra.gmra.mrb[42].mxu1 %vm157_vm0, %v5816_v52 }
 0xb0f   :  { %4823 = vmatprep.mubr.msk.f32.mxu1 %vm157_vm0, %v5829_v57 }
 0xb12   :  { %4824 = vmatmul.mubr.msk.f32.gmra.mrb[44].mxu1 %vm157_vm0, %v5827_v55 }
 0xb7c   :  { %v2641_v9 = vpop.trf.xlu0 }
 0xb7d   :  { %4809 = vmatprep.mubr.msk.f32.mxu0 %vm75_vm2, %v2641_v9 }
 0xb80   :  { %v2642_v12 = vpop.trf.xlu0 }
 0xb81   :  { %4810 = vmatmul.mubr.msk.f32.vlgmr.msra.gmra.mrb[42].mxu0 %vm75_vm2, %v2642_v12 }
 0xb82   :  { %5174 = vmatpush3.bf16.msra.mxu0 %v5788_v20  ;;  %4830 = vmatprep.mubr.msk.f32.mxu0 %vm157_vm0, %v5818_v54 }
 0xb83   :  { %5176 = vmatprep.subr.bf16.mxu0 %v5151_v0 }
 0xb85   :  { %4831 = vmatmul.mubr.msk.f32.vlgmr.msra.gmra.mrb[44].mxu0 %vm157_vm0, %v5816_v52 }
 0xb86   :  { %5178 = vmatpush3.bf16.msra.mxu0 %v5151_v0  ;;  %4833 = vmatprep.mubr.msk.f32.mxu0 %vm157_vm0, %v5829_v57 }
 0xb87   :  { %5180 = vmatprep.subr.bf16.mxu0 %v5155_v60 }
 0xb89   :  { %4834 = vmatmul.mubr.msk.f32.gmra.mrb[46].mxu0 %vm157_vm0, %v5827_v55 }
 0xb8a   :  { %5182 = vmatpush3.bf16.msra.mxu0 %v5155_v60 }
 0xbe1   :  { %v4822_v14 = vpop.f32.mrb[42].mxu1 }
 0xbe2   :  { %v2816_v15 = vpop.f32.mrb[43].mxu1 }
 0xbe3   :  { %4844 = vmatprep.mubr.msk.f32.mxu0 %vm75_vm2, %v2816_v15 }
 0xbe4   :  { %4845 = vmatmul.mubr.msk.f32.vlgmr.msra.gmra.mrb[48].mxu0 %vm75_vm2, %v4822_v14 }
 0xbe5   :  { %v4825_v59 = vpop.f32.mrb[44].mxu1 }
 0xbe6   :  { %v2826_v62 = vpop.f32.mrb[45].mxu1 }
 0xbe7   :  { %4847 = vmatprep.mubr.msk.f32.mxu0 %vm75_vm2, %v2826_v62 }
 0xbe8   :  { %4848 = vmatmul.mubr.msk.f32.gmra.mrb[50].mxu0 %vm75_vm2, %v4825_v59 }
 0xc54   :  { %v4811_v61 = vpop.f32.mrb[42].mxu0 }
 0xc55   :  { %v3032_v63 = vmul.f32 3.125e-05, %v4811_v61  ;;  %v2729_v7 = vpop.f32.mrb[43].mxu0 }
 0xc56   :  { %v3031_v8 = vmul.f32 3.125e-05, %v2729_v7 }
 0xc57   :  { %v5868_v16 = vadd.f32 %v3032_v63, %v3030_v4 }
 0xc58   :  { %v5870_v11 = vadd.f32 %v3031_v8, %v3029_v6  ;;  %v4832_v18 = vpop.f32.mrb[44].mxu0 }
 0xc59   :  { %v2901_v19 = vpop.f32.mrb[45].mxu0  ;;  %v2921_v34 = vmul.f32 0.9999, %v4832_v18  ;;  %v3460_v62 = vmul.f32 0.9999, %v5868_v16 }
 0xc5a   :  { %v5874_v20 = vpack.c.bf16 %v5868_v16, %v5870_v11  ;;  %v2920_v35 = vmul.f32 0.9999, %v2901_v19  ;;  %v3459_v63 = vmul.f32 0.9999, %v5870_v11 }
 0xc5c   :  { %v4835_v21 = vpop.f32.mrb[46].mxu0 }
 0xc5d   :  { %v2911_v32 = vpop.f32.mrb[47].mxu0  ;;  %v2923_v38 = vmul.f32 0.9999, %v4835_v21 }
 0xc5e   :  { %v2922_v25 = vmul.f32 0.9999, %v2911_v32 }
 0xcb7   :  { %v4846_v33 = vpop.f32.mrb[48].mxu0 }
 0xcb8   :  { %v3022_v13 = vmul.f32 3.125e-05, %v4846_v33  ;;  %v3002_v22 = vpop.f32.mrb[49].mxu0 }
 0xcb9   :  { %v3021_v36 = vmul.f32 3.125e-05, %v3002_v22 }
 0xcba   :  { %v3026_v17 = vadd.f32 %v3022_v13, %v2921_v34 }
 0xcbb   :  { %v3025_v37 = vadd.f32 %v3021_v36, %v2920_v35  ;;  %v4849_v23 = vpop.f32.mrb[50].mxu0 }
 0xcbc   :  { %v3040_v24 = vadd.f32 %v5793_v28, %v3026_v17  ;;  %v3024_v26 = vmul.f32 3.125e-05, %v4849_v23  ;;  %v3012_v30 = vpop.f32.mrb[51].mxu0 }
 0xcbd   :  { %v3039_v39 = vadd.f32 %v5799_v40, %v3025_v37  ;;  %v3023_v27 = vmul.f32 3.125e-05, %v3012_v30 }
 0xcbe   :  { %5312 = vtanh.f32 %v3040_v24  ;;  %v3028_v29 = vadd.f32 %v3024_v26, %v2923_v38 }
 0xcbf   :  { %5314 = vtanh.f32 %v3039_v39  ;;  %v3027_v41 = vadd.f32 %v3023_v27, %v2922_v25 }
 0xcc0   :  { %v3042_v31 = vadd.f32 %v5805_v43, %v3028_v29 }
 0xcc1   :  { %v3041_v42 = vadd.f32 %v5811_v45, %v3027_v41 }
 0xcc2   :  { %5316 = vtanh.f32 %v3042_v31 }
 0xcc3   :  { %5318 = vtanh.f32 %v3041_v42 }
 0xcc8   :  { %v5313_v44 = vpop.eup %5312 }
 0xcc9   :  { %v5315_v46 = vpop.eup %5314  ;;  %v3048_v48 = vmul.f32 0.01, %v5313_v44 }
 0xcca   :  { %v3047_v50 = vmul.f32 0.01, %v5315_v46 }
 0xccb   :  { %v5882_v1 = vadd.f32 %v3048_v48, %v3036_v47 }
 0xccc   :  { %v5317_v51 = vpop.eup %5316  ;;  %v5884_v53 = vadd.f32 %v3047_v50, %v3035_v49 }
 0xccd   :  { %v5319_v56 = vpop.eup %5318  ;;  %v3050_v58 = vmul.f32 0.01, %v5317_v51  ;;  %v3466_v44 = vmul.f32 0.995, %v5882_v1 }
 0xcce   :  { %v3049_v5 = vmul.f32 0.01, %v5319_v56  ;;  %3055 = vxpose.xlu1.b32.start [1/4] (short) (narrow) %v5884_v53, 16  ;;  %4869 = vmatprep.mubr.msk.f32.mxu0 %vm157_vm0, %v5884_v53  ;;  %v5183_v52 = vpack.c.bf16 %v5882_v1, %v5884_v53  ;;  %v3465_v47 = vmul.f32 0.995, %v5884_v53 }
 0xccf   :  { %v5893_v54 = vadd.f32 %v3050_v58, %v3038_v3 }
 0xcd0   :  { %v5895_v0 = vadd.f32 %v3049_v5, %v3037_v2  ;;  %5184 = vmatprep.subr.bf16.mxu1 %v5183_v52  ;;  %5193 = vmatprep.subr.msk.bf16.mxu0 %vm5400_vm1, %v5183_v52 }
 0xcd1   :  { %5186 = vmatpush3.bf16.msra.mxu1 %v5183_v52  ;;  %5196 = vmatpush3.bf16.xpose.msk.msra.mxu0 %vm5400_vm1, %v5183_v52  ;;  %v3468_v3 = vmul.f32 0.995, %v5893_v54 }
 0xcd2   :  { %3056 = vxpose.xlu1.b32.cont [2/4] (short) (narrow) %v5882_v1, 16  ;;  %v5187_v55 = vpack.c.bf16 %v5893_v54, %v5895_v0  ;;  %v3467_v2 = vmul.f32 0.995, %v5895_v0 }
 0xcd4   :  { %5188 = vmatprep.subr.bf16.mxu1 %v5187_v55  ;;  %5199 = vmatprep.subr.msk.bf16.mxu0 %vm5400_vm1, %v5187_v55 }
 0xcd5   :  { %5190 = vmatpush3.bf16.msra.mxu1 %v5187_v55 }
 0xcd6   :  { %3057 = vxpose.xlu1.b32.cont [3/4] (short) (narrow) %v5895_v0, 16  ;;  %5204 = vmatprep.subr.bf16.mxu1 %v5874_v20 }
 0xcd9   :  { %5202 = vmatpush3.bf16.xpose.msk.msra.mxu0 %vm5400_vm1, %v5187_v55 }
 0xcda   :  { %3058 = vxpose.xlu1.b32.end [4/4] (short) (narrow) %v5893_v54, 16 }
 0xce0   :  { %4870 = vmatmul.mubr.msk.f32.vlgmr.msra.gmra.mrb[52].mxu0 %vm157_vm0, %v5882_v1 }
 0xce1   :  { %4872 = vmatprep.mubr.msk.f32.mxu0 %vm157_vm0, %v5895_v0 }
 0xce4   :  { %4873 = vmatmul.mubr.msk.f32.gmra.mrb[54].mxu0 %vm157_vm0, %v5893_v54 }
 0xd4e   :  { %v3071_v57 = vpop.trf.xlu1 }
 0xd4f   :  { %4858 = vmatprep.mubr.msk.f32.mxu1 %vm75_vm2, %v3071_v57 }
 0xd52   :  { %v3072_v60 = vpop.trf.xlu1 }
 0xd53   :  { %4859 = vmatmul.mubr.msk.f32.vlgmr.msra.gmra.mrb[46].mxu1 %vm75_vm2, %v3072_v60 }
 0xd54   :  { %5206 = vmatpush3.bf16.msra.mxu1 %v5874_v20  ;;  %4879 = vmatprep.mubr.msk.f32.mxu1 %vm157_vm0, %v5884_v53 }
 0xd55   :  { %5208 = vmatprep.subr.bf16.mxu1 %v5183_v52 }
 0xd57   :  { %4880 = vmatmul.mubr.msk.f32.vlgmr.msra.gmra.mrb[48].mxu1 %vm157_vm0, %v5882_v1 }
 0xd58   :  { %5210 = vmatpush3.bf16.msra.mxu1 %v5183_v52  ;;  %4882 = vmatprep.mubr.msk.f32.mxu1 %vm157_vm0, %v5895_v0 }
 0xd59   :  { %5212 = vmatprep.subr.bf16.mxu1 %v5187_v55 }
 0xd5b   :  { %4883 = vmatmul.mubr.msk.f32.gmra.mrb[50].mxu1 %vm157_vm0, %v5893_v54 }
 0xd5c   :  { %5214 = vmatpush3.bf16.msra.mxu1 %v5187_v55 }
 0xdb3   :  { %v4871_v9 = vpop.f32.mrb[52].mxu0 }
 0xdb4   :  { %v3246_v12 = vpop.f32.mrb[53].mxu0 }
 0xdb5   :  { %4893 = vmatprep.mubr.msk.f32.mxu1 %vm75_vm2, %v3246_v12 }
 0xdb6   :  { %4894 = vmatmul.mubr.msk.f32.vlgmr.msra.gmra.mrb[52].mxu1 %vm75_vm2, %v4871_v9 }
 0xdb7   :  { %v4874_v14 = vpop.f32.mrb[54].mxu0 }
 0xdb8   :  { %v3256_v15 = vpop.f32.mrb[55].mxu0 }
 0xdb9   :  { %4896 = vmatprep.mubr.msk.f32.mxu1 %vm75_vm2, %v3256_v15 }
 0xdba   :  { %4897 = vmatmul.mubr.msk.f32.gmra.mrb[54].mxu1 %vm75_vm2, %v4874_v14 }
 0xe26   :  { %v4860_v59 = vpop.f32.mrb[46].mxu1 }
 0xe27   :  { %v3462_v61 = vmul.f32 3.125e-05, %v4860_v59  ;;  %v3159_v4 = vpop.f32.mrb[47].mxu1 }
 0xe28   :  { %v3461_v7 = vmul.f32 3.125e-05, %v3159_v4 }
 0xe29   :  { %v5934_v6 = vadd.f32 %v3462_v61, %v3460_v62 }
 0xe2a   :  { %v5936_v8 = vadd.f32 %v3461_v7, %v3459_v63  ;;  %v4881_v18 = vpop.f32.mrb[48].mxu1 }
 0xe2b   :  { %v3331_v19 = vpop.f32.mrb[49].mxu1  ;;  %v3351_v34 = vmul.f32 0.9999, %v4881_v18  ;;  %v3890_v14 = vmul.f32 0.9999, %v5934_v6 }
 0xe2c   :  { %v5940_v20 = vpack.c.bf16 %v5934_v6, %v5936_v8  ;;  %v3350_v22 = vmul.f32 0.9999, %v3331_v19  ;;  %v3889_v62 = vmul.f32 0.9999, %v5936_v8 }
 0xe2e   :  { %v4884_v21 = vpop.f32.mrb[50].mxu1 }
 0xe2f   :  { %v3341_v32 = vpop.f32.mrb[51].mxu1  ;;  %v3353_v37 = vmul.f32 0.9999, %v4884_v21 }
 0xe30   :  { %v3352_v26 = vmul.f32 0.9999, %v3341_v32 }
 0xe89   :  { %v4895_v33 = vpop.f32.mrb[52].mxu1 }
 0xe8a   :  { %v3452_v16 = vmul.f32 3.125e-05, %v4895_v33  ;;  %v3432_v13 = vpop.f32.mrb[53].mxu1 }
 0xe8b   :  { %v3451_v35 = vmul.f32 3.125e-05, %v3432_v13 }
 0xe8c   :  { %v3456_v11 = vadd.f32 %v3452_v16, %v3351_v34 }
 0xe8d   :  { %v3455_v36 = vadd.f32 %v3451_v35, %v3350_v22  ;;  %v4898_v17 = vpop.f32.mrb[54].mxu1 }
 0xe8e   :  { %v3470_v23 = vadd.f32 %v5793_v28, %v3456_v11  ;;  %v3454_v38 = vmul.f32 3.125e-05, %v4898_v17  ;;  %v3442_v24 = vpop.f32.mrb[55].mxu1 }
 0xe8f   :  { %v3469_v30 = vadd.f32 %v5799_v40, %v3455_v36  ;;  %v3453_v25 = vmul.f32 3.125e-05, %v3442_v24 }
 0xe90   :  { %5320 = vtanh.f32 %v3470_v23  ;;  %v3458_v39 = vadd.f32 %v3454_v38, %v3353_v37 }
 0xe91   :  { %5322 = vtanh.f32 %v3469_v30  ;;  %v3457_v27 = vadd.f32 %v3453_v25, %v3352_v26 }
 0xe92   :  { %v3472_v29 = vadd.f32 %v5805_v43, %v3458_v39 }
 0xe93   :  { %v3471_v41 = vadd.f32 %v5811_v45, %v3457_v27 }
 0xe94   :  { %5324 = vtanh.f32 %v3472_v29 }
 0xe95   :  { %5326 = vtanh.f32 %v3471_v41 }
 0xe9a   :  { %v5321_v31 = vpop.eup %5320 }
 0xe9b   :  { %v5323_v42 = vpop.eup %5322  ;;  %v3478_v46 = vmul.f32 0.01, %v5321_v31 }
 0xe9c   :  { %v3477_v48 = vmul.f32 0.01, %v5323_v42  ;;  %v4247_v42 = vld [vmem:[%s6048_s2] ss:$0 sm:$0xff] }
 0xe9d   :  { %v5948_v49 = vadd.f32 %v3478_v46, %v3466_v44 }
 0xe9e   :  { %v5325_v50 = vpop.eup %5324  ;;  %v5950_v51 = vadd.f32 %v3477_v48, %v3465_v47 }
 0xe9f   :  { %v5327_v56 = vpop.eup %5326  ;;  %v3480_v58 = vmul.f32 0.01, %v5325_v50 }
 0xea0   :  { %v3479_v5 = vmul.f32 0.01, %v5327_v56  ;;  %3485 = vxpose.xlu0.b32.start [1/4] (short) (narrow) %v5950_v51, 16  ;;  %4918 = vmatprep.mubr.msk.f32.mxu1 %vm157_vm0, %v5950_v51  ;;  %v5215_v1 = vpack.c.bf16 %v5948_v49, %v5950_v51  ;;  %v3895_v41 = vmul.f32 0.995, %v5950_v51 }
 0xea1   :  { %v5959_v53 = vadd.f32 %v3480_v58, %v3468_v3 }
 0xea2   :  { %v5961_v52 = vadd.f32 %v3479_v5, %v3467_v2  ;;  %5216 = vmatprep.subr.bf16.mxu0 %v5215_v1  ;;  %5225 = vmatprep.subr.msk.bf16.mxu1 %vm5400_vm1, %v5215_v1  ;;  %v11_v5 = vstv %s6049_s3 }
 0xea3   :  { %5218 = vmatpush3.bf16.msra.mxu0 %v5215_v1  ;;  %5228 = vmatpush3.bf16.xpose.msk.msra.mxu1 %vm5400_vm1, %v5215_v1  ;;  %12 = vst [vmem:[#allocation2] sm:$0x1] %v11_v5 }
 0xea4   :  { %3486 = vxpose.xlu0.b32.cont [2/4] (short) (narrow) %v5948_v49, 16  ;;  %v5219_v54 = vpack.c.bf16 %v5959_v53, %v5961_v52 }
 0xea6   :  { %5220 = vmatprep.subr.bf16.mxu0 %v5219_v54  ;;  %5231 = vmatprep.subr.msk.bf16.mxu1 %vm5400_vm1, %v5219_v54 }
 0xea7   :  { %5222 = vmatpush3.bf16.msra.mxu0 %v5219_v54 }
 0xea8   :  { %3487 = vxpose.xlu0.b32.cont [3/4] (short) (narrow) %v5961_v52, 16  ;;  %5236 = vmatprep.subr.bf16.mxu0 %v5940_v20 }
 0xeab   :  { %5234 = vmatpush3.bf16.xpose.msk.msra.mxu1 %vm5400_vm1, %v5219_v54 }
 0xeac   :  { %3488 = vxpose.xlu0.b32.end [4/4] (short) (narrow) %v5959_v53, 16 }
 0xeb2   :  { %4919 = vmatmul.mubr.msk.f32.vlgmr.msra.gmra.mrb[56].mxu1 %vm157_vm0, %v5948_v49 }
 0xeb3   :  { %4921 = vmatprep.mubr.msk.f32.mxu1 %vm157_vm0, %v5961_v52 }
 0xeb6   :  { %4922 = vmatmul.mubr.msk.f32.gmra.mrb[58].mxu1 %vm157_vm0, %v5959_v53 }
 0xf20   :  { %v3501_v0 = vpop.trf.xlu0 }
 0xf21   :  { %4907 = vmatprep.mubr.msk.f32.mxu0 %vm75_vm2, %v3501_v0 }
 0xf24   :  { %v3502_v55 = vpop.trf.xlu0 }
 0xf25   :  { %4908 = vmatmul.mubr.msk.f32.vlgmr.msra.gmra.mrb[56].mxu0 %vm75_vm2, %v3502_v55 }
 0xf26   :  { %5238 = vmatpush3.bf16.msra.mxu0 %v5940_v20  ;;  %4928 = vmatprep.mubr.msk.f32.mxu0 %vm157_vm0, %v5950_v51 }
 0xf27   :  { %5240 = vmatprep.subr.bf16.mxu0 %v5215_v1 }
 0xf29   :  { %4929 = vmatmul.mubr.msk.f32.vlgmr.msra.gmra.mrb[58].mxu0 %vm157_vm0, %v5948_v49 }
 0xf2a   :  { %5242 = vmatpush3.bf16.msra.mxu0 %v5215_v1  ;;  %4931 = vmatprep.mubr.msk.f32.mxu0 %vm157_vm0, %v5961_v52 }
 0xf2b   :  { %5244 = vmatprep.subr.bf16.mxu0 %v5219_v54 }
 0xf2d   :  { %4932 = vmatmul.mubr.msk.f32.gmra.mrb[60].mxu0 %vm157_vm0, %v5959_v53 }
 0xf2e   :  { %5246 = vmatpush3.bf16.msra.mxu0 %v5219_v54 }
 0xf85   :  { %v4920_v10 = vpop.f32.mrb[56].mxu1 }
 0xf86   :  { %v3676_v57 = vpop.f32.mrb[57].mxu1 }
 0xf87   :  { %4942 = vmatprep.mubr.msk.f32.mxu0 %vm75_vm2, %v3676_v57 }
 0xf88   :  { %4943 = vmatmul.mubr.msk.f32.vlgmr.msra.gmra.mrb[62].mxu0 %vm75_vm2, %v4920_v10 }
 0xf89   :  { %v4923_v60 = vpop.f32.mrb[58].mxu1 }
 0xf8a   :  { %v3686_v9 = vpop.f32.mrb[59].mxu1 }
 0xf8b   :  { %4945 = vmatprep.mubr.msk.f32.mxu0 %vm75_vm2, %v3686_v9 }
 0xf8c   :  { %4946 = vmatmul.mubr.msk.f32.gmra.mrb[64].mxu0 %vm75_vm2, %v4923_v60  ;;  %v4248_v60 = vld [vmem:[#allocation2] ss:$0 sm:$0xff] }
 0xff8   :  { %v4909_v12 = vpop.f32.mrb[56].mxu0 }
 0xff9   :  { %v3892_v15 = vmul.f32 3.125e-05, %v4909_v12  ;;  %v3589_v59 = vpop.f32.mrb[57].mxu0 }
 0xffa   :  { %v3891_v61 = vmul.f32 3.125e-05, %v3589_v59 }
 0xffb   :  { %v6000_v4 = vadd.f32 %v3892_v15, %v3890_v14 }
 0xffc   :  { %v6002_v63 = vadd.f32 %v3891_v61, %v3889_v62  ;;  %v4930_v7 = vpop.f32.mrb[58].mxu0 }
 0xffd   :  { %v3761_v18 = vpop.f32.mrb[59].mxu0  ;;  %v3781_v32 = vmul.f32 0.9999, %v4930_v7 }
 0xffe   :  { %v3780_v16 = vmul.f32 0.9999, %v3761_v18 }
0x1000   :  { %v4933_v19 = vpop.f32.mrb[60].mxu0 }
0x1001   :  { %v3771_v20 = vpop.f32.mrb[61].mxu0  ;;  %v3783_v11 = vmul.f32 0.9999, %v4933_v19  ;;  %v4029_v19 = vmul.f32 0.9999, %v6000_v4 }
0x1002   :  { %v3782_v37 = vmul.f32 0.9999, %v3771_v20 }
0x105b   :  { %v4944_v21 = vpop.f32.mrb[62].mxu0 }
0x105c   :  { %v3882_v33 = vmul.f32 3.125e-05, %v4944_v21  ;;  %v3862_v34 = vpop.f32.mrb[63].mxu0 }
0x105d   :  { %v3881_v13 = vmul.f32 3.125e-05, %v3862_v34 }
0x105e   :  { %v3886_v6 = vadd.f32 %v3882_v33, %v3781_v32  ;;  %v4028_v32 = vmul.f32 0.9999, %v6002_v63 }
0x105f   :  { %v3885_v22 = vadd.f32 %v3881_v13, %v3780_v16  ;;  %v4947_v35 = vpop.f32.mrb[64].mxu0 }
0x1060   :  { %v3900_v8 = vadd.f32 %v5793_v28, %v3886_v6  ;;  %v3884_v36 = vmul.f32 3.125e-05, %v4947_v35  ;;  %v3872_v17 = vpop.f32.mrb[65].mxu0  ;;  %v3896_v28 = vmul.f32 0.995, %v5948_v49 }
0x1061   :  { %v3899_v23 = vadd.f32 %v5799_v40, %v3885_v22  ;;  %v3883_v38 = vmul.f32 3.125e-05, %v3872_v17  ;;  %v3897_v49 = vmul.f32 0.995, %v5961_v52 }
0x1062   :  { %5328 = vtanh.f32 %v3900_v8  ;;  %v3888_v24 = vadd.f32 %v3884_v36, %v3783_v11 }
0x1063   :  { %5330 = vtanh.f32 %v3899_v23  ;;  %v3887_v26 = vadd.f32 %v3883_v38, %v3782_v37 }
0x1064   :  { %v3902_v30 = vadd.f32 %v5805_v43, %v3888_v24 }
0x1065   :  { %v3901_v25 = vadd.f32 %v5811_v45, %v3887_v26  ;;  %v3898_v45 = vmul.f32 0.995, %v5959_v53 }
0x1066   :  { %5332 = vtanh.f32 %v3902_v30 }
0x1067   :  { %5334 = vtanh.f32 %v3901_v25 }
0x106c   :  { %v5329_v39 = vpop.eup %5328 }
0x106d   :  { %v5331_v27 = vpop.eup %5330  ;;  %v3908_v29 = vmul.f32 0.01, %v5329_v39 }
0x106e   :  { %v3907_v31 = vmul.f32 0.01, %v5331_v27 }
0x106f   :  { %v3912_v40 = vadd.f32 %v3908_v29, %v3896_v28 }
0x1070   :  { %v5333_v44 = vpop.eup %5332  ;;  %v3911_v46 = vadd.f32 %v3907_v31, %v3895_v41 }
0x1071   :  { %v5335_v43 = vpop.eup %5334  ;;  %v3910_v47 = vmul.f32 0.01, %v5333_v44  ;;  %v4044_v1 = vmul.f32 %v4247_v42, %v3912_v40 }
0x1072   :  { %v3909_v48 = vmul.f32 0.01, %v5335_v43  ;;  %3915 = vxpose.xlu1.b32.start [1/4] (short) (narrow) %v3911_v46, 16  ;;  %v5247_v50 = vpack.c.bf16 %v3912_v40, %v3911_v46  ;;  %v4043_v56 = vmul.f32 %v4247_v42, %v3911_v46 }
0x1073   :  { %v3914_v3 = vadd.f32 %v3910_v47, %v3898_v45  ;;  %v4050_v53 = vsel %vm157_vm0, %v4044_v1, 0.0 }
0x1074   :  { %5248 = vmatprep.subr.bf16.mxu1 %v5247_v50  ;;  %v4047_v51 = vsel %vm157_vm0, %v4043_v56, 0.0  ;;  %v3913_v58 = vadd.f32 %v3909_v48, %v3897_v49 }
0x1075   :  { %4048 = vadd.xlane.f32.xlu0 %v4047_v51  ;;  %5250 = vmatpush3.bf16.msra.mxu1 %v5247_v50  ;;  %v4046_v0 = vmul.f32 %v4247_v42, %v3914_v3 }
0x1076   :  { %3916 = vxpose.xlu1.b32.cont [2/4] (short) (narrow) %v3912_v40, 16  ;;  %v5251_v2 = vpack.c.bf16 %v3914_v3, %v3913_v58  ;;  %v4045_v52 = vmul.f32 %v4247_v42, %v3913_v58 }
0x1077   :  { %v4056_v55 = vsel %vm157_vm0, %v4046_v0, 0.0 }
0x1078   :  { %5252 = vmatprep.subr.bf16.mxu1 %v5251_v2  ;;  %v4053_v54 = vsel %vm157_vm0, %v4045_v52, 0.0 }
0x1079   :  { %5254 = vmatpush3.bf16.msra.mxu1 %v5251_v2 }
0x107a   :  { %3917 = vxpose.xlu1.b32.cont [3/4] (short) (narrow) %v3913_v58, 16 }
0x107e   :  { %3918 = vxpose.xlu1.b32.end [4/4] (short) (narrow) %v3914_v3, 16 }
0x10a5   :  { %4051 = vadd.xlane.f32.xlu1 %v4050_v53 }
0x10a9   :  { %4054 = vadd.xlane.f32.xlu1 %v4053_v54 }
0x10ad   :  { %4057 = vadd.xlane.f32.xlu1 %v4056_v55 }
0x10f2   :  { %v3931_v10 = vpop.trf.xlu1 }
0x10f3   :  { %4956 = vmatprep.mubr.msk.f32.mxu1 %vm75_vm2, %v3931_v10 }
0x10f6   :  { %v3932_v57 = vpop.trf.xlu1 }
0x10f7   :  { %4957 = vmatmul.mubr.msk.f32.vlgmr.msra.gmra.mrb[60].mxu1 %vm75_vm2, %v3932_v57 }
0x1102   :  { %v4049_v9 = vpop.xlane.xlu0 %4048 }
0x1103   :  { %v4066_v12 = vadd.f32 %v4248_v60, %v4049_v9 }
0x1105   :  { %4071 = vst.msk [vmem:[%s6050_s4] sm:$0xff] %vm4070_vm3, %v4066_v12 }
0x1132   :  { %v4052_v14 = vpop.xlane.xlu1 %4051 }
0x1133   :  { %v4067_v15 = vadd.f32 %v4248_v60, %v4052_v14 }
0x1135   :  { %4072 = vst.msk [vmem:[%s6050_s4 + $0x8] sm:$0xff] %vm4070_vm3, %v4067_v15 }
0x1136   :  { %v4055_v59 = vpop.xlane.xlu1 %4054 }
0x1137   :  { %v4068_v62 = vadd.f32 %v4248_v60, %v4055_v59 }
0x1139   :  { %4073 = vst.msk [vmem:[%s6050_s4 + $0x10] sm:$0xff] %vm4070_vm3, %v4068_v62 }
0x113a   :  { %v4058_v61 = vpop.xlane.xlu1 %4057 }
0x113b   :  { %v4069_v7 = vadd.f32 %v4248_v60, %v4058_v61 }
0x113d   :  { %4074 = vst.msk [vmem:[%s6050_s4 + $0x18] sm:$0xff] %vm4070_vm3, %v4069_v7 }
0x11ca   :  { %v4958_v18 = vpop.f32.mrb[60].mxu1 }
0x11cb   :  { %v4031_v20 = vmul.f32 3.125e-05, %v4958_v18  ;;  %v4019_v21 = vpop.f32.mrb[61].mxu1 }
0x11cc   :  { %v4030_v33 = vmul.f32 3.125e-05, %v4019_v21 }
0x11cd   :  { %v4033_v34 = vadd.f32 %v4031_v20, %v4029_v19 }
0x11ce   :  { %v4032_v16 = vadd.f32 %v4030_v33, %v4028_v32 }
0x11cf   :  { %4035 = vst.msk [vmem:[%s6051_s5 + $0x8] sm:$0xff] %vm157_vm0, %v4033_v34 }
0x11d0   :  { %4034 = vst.msk [vmem:[%s6051_s5] sm:$0xff] %vm157_vm0, %v4032_v16 }

</bundles_post_ra>
